<compile_context>
chip_gen: v5e
topology: v5e:2x2
jax: 0.10.0
libtpu: 0.0.40
codegen_flags: <defaults>
</compile_context>

<pallas_src>
import numpy as np
import jax
import jax.numpy as jnp
from jax import lax
from jax.experimental import pallas as pl
from jax.experimental.pallas import tpu as pltpu

EPS = 1e-5  # PyTorch BatchNorm default eps

CONFIG = dict(
    dims=(16, 16),
    K=10,
    conv_layer_shape=(3, 3, 4, 8),                    # (KH, KW, Cin, Cout)
    block_shapes=[
        {"main": [(3, 3, 8, 8), (3, 3, 8, 16)], "skip": (1, 1, 8, 16)},   # conv block
        {"main": [(3, 3, 16, 16), (3, 3, 16, 16)]},                       # identity block
    ],
    pool_szs=[2, 1, 2, 2],   # after pre-conv, after block1, after block2, final avg-pool
    hidden_droprates=[0.1, 0.1],
    hidden_layer_sizes=[32],
)


# ----------------------------------------------------------------------------
# Deterministic synthetic parameters (same construction as before)
# ----------------------------------------------------------------------------

def bn_fold(gamma, beta, mean, var, eps=EPS):
    scale = gamma / jnp.sqrt(var + eps)
    shift = beta - mean * scale
    return scale, shift


def conv_w(key, kh, kw, cin, cout):
    fan_in = float(kh * kw * cin)
    return (jax.random.normal(key, (kh, kw, cin, cout), jnp.float32)
            / jnp.sqrt(fan_in)).astype(jnp.float32)


def bn_params(key, c):
    k1, k2, k3, k4 = jax.random.split(key, 4)
    gamma = 1.0 + 0.1 * jax.random.normal(k1, (c,), jnp.float32)
    beta = 0.1 * jax.random.normal(k2, (c,), jnp.float32)
    mean = 0.1 * jax.random.normal(k3, (c,), jnp.float32)
    var = 1.0 + 0.1 * jnp.abs(jax.random.normal(k4, (c,), jnp.float32))
    return gamma, beta, mean, var


def init_params(key, cfg):
    keys = iter(jax.random.split(key, 64))
    params = {}
    s = cfg["conv_layer_shape"]
    params["pre_conv"] = conv_w(next(keys), *s)
    params["pre_bn"] = bn_params(next(keys), s[3])

    blocks = []
    for bs in cfg["block_shapes"]:
        b = {"main": [], "main_bn": []}
        for ms in bs["main"]:
            b["main"].append(conv_w(next(keys), *ms))
            b["main_bn"].append(bn_params(next(keys), ms[3]))
        if bs.get("skip") is not None:
            ss = bs["skip"]
            b["skip"] = conv_w(next(keys), *ss)
            b["skip_bn"] = bn_params(next(keys), ss[3])
        blocks.append(b)
    params["blocks"] = blocks

    num_fmaps = cfg["block_shapes"][-1]["main"][-1][3]
    pool_redux = int(np.prod(cfg["pool_szs"]))
    D = (cfg["dims"][0] // pool_redux) * (cfg["dims"][1] // pool_redux) * num_fmaps
    M1 = D
    denses, dense_bns = [], []
    for M2 in cfg["hidden_layer_sizes"]:
        denses.append(jax.random.normal(next(keys), (M1, M2), jnp.float32) / jnp.sqrt(float(M1)))
        dense_bns.append(bn_params(next(keys), M2))
        M1 = M2
    params["denses"] = denses
    params["dense_bns"] = dense_bns
    params["logistic_w"] = jax.random.normal(next(keys), (M1, cfg["K"]), jnp.float32) / jnp.sqrt(float(M1))
    params["logistic_b"] = 0.1 * jax.random.normal(next(keys), (cfg["K"],), jnp.float32)
    return params


# ----------------------------------------------------------------------------
# One-time parameter preparation: fold BN, build banded conv weights, pooling
# selection matrices, the fused avg-pool/flatten/dense head, and pack EVERYTHING
# into a single (rows, 128) f32 slab (one DMA).
# ----------------------------------------------------------------------------

class _SlabPacker:
    """Packs 2-D f32 arrays into one (rows, 128) slab; rows padded to multiples
    of 8 so every static slice inside the kernel is sublane-aligned."""

    def __init__(self, width=128):
        self.width = width
        self.rows = 0
        self.chunks = []

    def add(self, arr):
        arr = np.asarray(arr, np.float32)
        assert arr.ndim == 2, arr.shape
        r, c = arr.shape
        assert c <= self.width, f"array too wide for slab: {arr.shape}"
        rp = -(-r // 8) * 8
        buf = np.zeros((rp, self.width), np.float32)
        buf[:r, :c] = arr
        off = self.rows
        self.chunks.append(buf)
        self.rows += rp
        return (off, r, c)

    def finalize(self):
        return jnp.asarray(np.concatenate(self.chunks, axis=0))


def _banded_conv_weight(w, width):
    """(KH, KW, Cin, Cout) SAME conv -> KH banded matrices (width*Cin, width*Cout)
    acting on lane-dense rows (w'*Cin + ci) -> (w*Cout + co).  Zero padding along
    W is implicit (edge bands absent)."""
    w = np.asarray(w, np.float32)
    KH, KW, Cin, Cout = w.shape
    pw = KW // 2
    mats = np.zeros((KH, width * Cin, width * Cout), np.float32)
    for kh in range(KH):
        for kw in range(KW):
            band = np.eye(width, width, pw - kw, dtype=np.float32)  # E[w',w]=1 iff w'=w+kw-pw
            mats[kh] += np.einsum("pq,io->piqo", band, w[kh, kw]).reshape(width * Cin, width * Cout)
    return mats


def prepare_inputs(params, cfg, batch):
    H, W = cfg["dims"]
    pack = _SlabPacker(128)
    plan = []
    st = dict(H=H, W=W, C=cfg["conv_layer_shape"][2])

    def emit_conv(w, bn, relu, kind="conv", in_channels=None):
        w = np.asarray(w, np.float32)
        KH, KW, Cin, Cout = w.shape
        assert KH == KW and KH % 2 == 1, "only odd square kernels supported"
        expect_c = st["C"] if in_channels is None else in_channels
        assert Cin == expect_c, "channel mismatch while building plan"
        width = st["W"]
        sc, sh = (np.asarray(a, np.float32) for a in bn_fold(*bn))
        bands = _banded_conv_weight(w, width)                       # (KH, W*Cin, W*Cout)
        # BN scale folded into the weight columns; K-stack the KH bands so the
        # conv is ONE matmul with K = KH*W*Cin (192/384 on this config).
        wcat = (bands * np.tile(sc, width)[None, None, :]).reshape(KH * width * Cin, width * Cout)
        lay_w = pack.add(wcat)
        lay_s = pack.add(np.tile(sh, width).reshape(1, -1))
        plan.append((kind, lay_w, lay_s, KH, st["H"], relu))
        return Cout

    def emit_maxpool(k):
        H_, W_, C_ = st["H"], st["W"], st["C"]
        ho, wo = H_ // k, W_ // k
        # Block-diagonal (over the stacked batch) row selection of every k-th row.
        hsel = np.zeros((batch * ho, batch * H_), np.float32)
        for n in range(batch):
            for i in range(ho):
                hsel[n * ho + i, n * H_ + k * i] = 1.0
        # Lane-block selection of every k-th channel block.
        wsel = np.zeros((W_ * C_, wo * C_), np.float32)
        for i in range(wo):
            wsel[k * i * C_:(k * i + 1) * C_, i * C_:(i + 1) * C_] = np.eye(C_, dtype=np.float32)
        plan.append(("max_pool", pack.add(hsel), pack.add(wsel), C_, k))
        st["H"], st["W"] = ho, wo

    # pre conv -> bn -> relu -> maxpool
    st["C"] = emit_conv(params["pre_conv"], params["pre_bn"], relu=True)
    if cfg["pool_szs"][0] > 1:
        emit_maxpool(cfg["pool_szs"][0])

    # residual blocks
    for i, bp in enumerate(params["blocks"], 1):
        plan.append(("save",))
        saved_c = st["C"]
        n_main = len(bp["main"])
        for j, (wm, bnm) in enumerate(zip(bp["main"], bp["main_bn"])):
            st["C"] = emit_conv(wm, bnm, relu=(j < n_main - 1))
        if "skip" in bp:
            emit_conv(bp["skip"], bp["skip_bn"], relu=False, kind="skip_conv", in_channels=saved_c)
        else:
            assert st["C"] == saved_c, "identity skip requires matching channels"
            plan.append(("identity_skip",))
        plan.append(("add_relu",))
        if cfg["pool_szs"][i] > 1:
            emit_maxpool(cfg["pool_szs"][i])

    # Dense head: final avg-pool (linear) + NCHW flatten + first dense (+BN scale)
    # folded into composed weights at prep time.
    k_avg = cfg["pool_szs"][-1]
    Hp, Wp, C_ = st["H"], st["W"], st["C"]
    Ho, Wo = Hp // k_avg, Wp // k_avg
    denses, dense_bns = params["denses"], params["dense_bns"]
    if denses:
        w1 = np.asarray(denses[0], np.float32)
        s1, t1 = (np.asarray(a, np.float32) for a in bn_fold(*dense_bns[0]))
        head_relu = True
    else:
        w1 = np.asarray(params["logistic_w"], np.float32)
        s1 = np.ones(w1.shape[1], np.float32)
        t1 = np.asarray(params["logistic_b"], np.float32)
        head_relu = False
    M = w1.shape[1]
    assert Hp * M <= 128, "head lane-concat exceeds slab width"
    inv = 1.0 / float(k_avg * k_avg)
    # W_fold[h][w*C + c, m] = avg-pool weight * W1[NCHW flatten index, m] * bn_scale[m]
    wfold = np.zeros((Hp, Wp * C_, M), np.float32)
    for h in range(Hp):
        for w in range(Wp):
            for c in range(C_):
                row = c * (Ho * Wo) + (h // k_avg) * Wo + (w // k_avg)
                wfold[h, w * C_ + c, :] = inv * w1[row, :] * s1
    wcat = np.ascontiguousarray(wfold.transpose(1, 0, 2).reshape(Wp * C_, Hp * M))
    mask = np.zeros((batch * Hp, Hp * M), np.float32)
    comb = np.zeros((batch, batch * Hp), np.float32)
    for n in range(batch):
        comb[n, n * Hp:(n + 1) * Hp] = 1.0
        for h in range(Hp):
            mask[n * Hp + h, h * M:(h + 1) * M] = 1.0
    fold = np.zeros((Hp * M, M), np.float32)
    for h in range(Hp):
        fold[h * M:(h + 1) * M, :] = np.eye(M, dtype=np.float32)
    plan.append(("head_spatial", pack.add(wcat), pack.add(mask), pack.add(fold),
                 pack.add(comb), pack.add(t1.reshape(1, -1)), head_relu))

    # Remaining hidden dense layers (BN scale folded into columns) + logistic head.
    for wd, bnd in zip(denses[1:], dense_bns[1:]):
        s, t = (np.asarray(a, np.float32) for a in bn_fold(*bnd))
        plan.append(("dense", pack.add(np.asarray(wd, np.float32) * s[None, :]),
                     pack.add(t.reshape(1, -1)), True))
    if denses:
        plan.append(("dense", pack.add(np.asarray(params["logistic_w"], np.float32)),
                     pack.add(np.asarray(params["logistic_b"], np.float32).reshape(1, -1)), False))

    meta = dict(out_dim=cfg["K"], batch=batch)
    return tuple(plan), pack.finalize(), meta


# ----------------------------------------------------------------------------
# Fused Pallas kernel
# ----------------------------------------------------------------------------

def _shift_mask(nh, h_img, d, cache):
    """(nh, 1) f32 mask that zeroes rows whose within-image H-shift by d falls
    outside [0, H) -- i.e. implements zero padding along H for the batch-stacked
    activation.  Memoized per (nh, H, d) so the iota is built once per trace."""
    key = (nh, h_img, d)
    if key not in cache:
        pos = lax.broadcasted_iota(jnp.int32, (nh, 1), 0) % h_img
        ok = jnp.logical_and(pos + d >= 0, pos + d < h_img)
        cache[key] = ok.astype(jnp.float32)
    return cache[key]


def _conv_same(act, w, shift, kh_sz, h_img, relu, cache):
    """act: (N*H, W*Cin) lane-dense, batch stacked along sublanes.
    w: (KH*W*Cin, W*Cout) K-stacked banded weight with BN scale folded in.
    H padding uses pltpu.roll (XLU) + edge masks (VPU); W padding is implicit in
    the banded weight.  One MXU matmul per conv, no VMEM scratch."""
    if kh_sz == 1:
        y = jnp.dot(act, w, preferred_element_type=jnp.float32)
    else:
        nh = act.shape[0]
        ph = kh_sz // 2
        copies = []
        for kh in range(kh_sz):
            d = kh - ph                                   # source row = out row + d
            if d == 0:
                copies.append(act)
            else:
                rolled = pltpu.roll(act, (-d) % nh, axis=0)
                copies.append(rolled * _shift_mask(nh, h_img, d, cache))
        y = jnp.dot(jnp.concatenate(copies, axis=-1), w,
                    preferred_element_type=jnp.float32)
    y = y + shift
    return jnp.maximum(y, 0.0) if relu else y


def _max_pool(act, hsel, wsel, chan, k):
    """k x k max pool: neighbour max via rolls (XLU), then one selection matmul
    per direction (every k-th row / every k-th channel block)."""
    nh, wc = act.shape
    zh = act
    for j in range(1, k):
        zh = jnp.maximum(zh, pltpu.roll(act, (nh - j) % nh, axis=0))
    xh = jnp.dot(hsel, zh, preferred_element_type=jnp.float32)
    zw = xh
    for j in range(1, k):
        zw = jnp.maximum(zw, pltpu.roll(xh, (wc - j * chan) % wc, axis=1))
    return jnp.dot(zw, wsel, preferred_element_type=jnp.float32)


def _head_spatial(act, wcat, mask, fold, comb, shift, relu):
    """Fused avg-pool + NCHW flatten + first dense (+BN) on the batch-stacked
    trunk output act (N*Hp, Wp*C): 3 matmuls + one precomputed mask -> (N, M)."""
    p = jnp.dot(act, wcat, preferred_element_type=jnp.float32)         # (N*Hp, Hp*M)
    q = jnp.dot(p * mask, fold, preferred_element_type=jnp.float32)    # (N*Hp, M)
    y = jnp.dot(comb, q, preferred_element_type=jnp.float32) + shift   # (N, M)
    return jnp.maximum(y, 0.0) if relu else y


def _dense(act, w, shift, relu):
    y = jnp.dot(act, w, preferred_element_type=jnp.float32) + shift
    return jnp.maximum(y, 0.0) if relu else y


def _build_kernel(plan):
    def kernel(x_ref, slab_ref, out_ref):
        def take(lay):
            off, r, c = lay
            return slab_ref[off:off + r, 0:c]     # static, sublane-aligned slice

        cache = {}
        act = x_ref[...]                          # (N*H, W*Cin), whole batch stacked
        saved = None
        skip = None
        for op in plan:
            kind = op[0]
            if kind in ("conv", "skip_conv"):
                _, lay_w, lay_s, kh_sz, h_img, relu = op
                src = saved if kind == "skip_conv" else act
                res = _conv_same(src, take(lay_w), take(lay_s), kh_sz, h_img, relu, cache)
                if kind == "skip_conv":
                    skip = res
                else:
                    act = res
            elif kind == "save":
                saved = act
            elif kind == "identity_skip":
                skip = saved
            elif kind == "add_relu":
                act = jnp.maximum(act + skip, 0.0)
            elif kind == "max_pool":
                _, lay_h, lay_w, chan, k = op
                act = _max_pool(act, take(lay_h), take(lay_w), chan, k)
            elif kind == "head_spatial":
                _, lw, lm, lf, lc, ls, relu = op
                act = _head_spatial(act, take(lw), take(lm), take(lf), take(lc), take(ls), relu)
            elif kind == "dense":
                _, lw, ls, relu = op
                act = _dense(act, take(lw), take(ls), relu)
        out_ref[...] = act.astype(out_ref.dtype)
        # TODO(synk): training-mode BatchNorm (batch statistics) and Dropout
        # masking are not implemented (eval-mode forward only).
    return kernel


def resnet_forward(plan, slab, meta, x_nchw):
    n, cin, h, w = x_nchw.shape
    assert n == meta["batch"], "plan was prepared for a different batch size"
    # NCHW -> batch-stacked lane-dense (N*H, W*Cin); only XLA op on activations.
    x_lane = jnp.transpose(x_nchw, (0, 2, 3, 1)).reshape(n * h, w * cin).astype(jnp.float32)
    vmem = pl.BlockSpec(memory_space=pltpu.MemorySpace.VMEM)
    return pl.pallas_call(
        _build_kernel(plan),
        out_shape=jax.ShapeDtypeStruct((n, meta["out_dim"]), jnp.float32),
        in_specs=[vmem, vmem],      # just 2 inputs: activations + packed weight slab
        out_specs=vmem,
    )(x_lane, slab)


# ----------------------------------------------------------------------------
# Plain-JAX reference (eval-mode semantics, HIGHEST precision) for correctness
# ----------------------------------------------------------------------------

def _ref_pool(x, k, op):
    n, h, w, c = x.shape
    return op(x.reshape(n, h // k, k, w // k, k, c), axis=(2, 4))


def _reference_forward(params, x_nchw, cfg):
    hi = jax.lax.Precision.HIGHEST

    def conv(x, w):
        return jax.lax.conv_general_dilated(
            x, w, window_strides=(1, 1), padding="SAME",
            dimension_numbers=("NHWC", "HWIO", "NHWC"), precision=hi)

    x = jnp.transpose(x_nchw, (0, 2, 3, 1)).astype(jnp.float32)
    sc, sh = bn_fold(*params["pre_bn"])
    x = jnp.maximum(conv(x, params["pre_conv"]) * sc + sh, 0.0)
    x = _ref_pool(x, cfg["pool_szs"][0], jnp.max)
    for i, bp in enumerate(params["blocks"], 1):
        fx = x
        n_main = len(bp["main"])
        for j, (w, bn) in enumerate(zip(bp["main"], bp["main_bn"])):
            s1, s2 = bn_fold(*bn)
            fx = conv(fx, w) * s1 + s2
            if j < n_main - 1:
                fx = jnp.maximum(fx, 0.0)
        if "skip" in bp:
            s1, s2 = bn_fold(*bp["skip_bn"])
            x = conv(x, bp["skip"]) * s1 + s2
        x = jnp.maximum(fx + x, 0.0)
        if cfg["pool_szs"][i] > 1:
            x = _ref_pool(x, cfg["pool_szs"][i], jnp.max)
    x = _ref_pool(x, cfg["pool_szs"][-1], jnp.mean)
    x = jnp.transpose(x, (0, 3, 1, 2)).reshape(x.shape[0], -1)   # NCHW-order flatten
    for w, bn in zip(params["denses"], params["dense_bns"]):
        s1, s2 = bn_fold(*bn)
        x = jnp.maximum(jnp.dot(x, w, precision=hi) * s1 + s2, 0.0)
    return jnp.dot(x, params["logistic_w"], precision=hi) + params["logistic_b"]


# ----------------------------------------------------------------------------

if __name__ == "__main__":
    key = jax.random.PRNGKey(0)
    pkey, xkey = jax.random.split(key)
    params = init_params(pkey, CONFIG)

    # Input matches PyTorch NCHW convention: (batch, Cin, H, W)
    x = jax.random.normal(
        xkey, (2, CONFIG["conv_layer_shape"][2], CONFIG["dims"][0], CONFIG["dims"][1]),
        jnp.float32)

    # One-time weight preparation (BN folding, banded conv expansion, pooling
    # selections, fused avg-pool/flatten/dense head, single-slab packing).
    plan, slab, meta = prepare_inputs(params, CONFIG, batch=x.shape[0])

    fwd = jax.jit(lambda s, inp: resnet_forward(plan, s, meta, inp))
    logits = fwd(slab, x)
    jax.block_until_ready(logits)

    assert logits.shape == (2, CONFIG["K"])
    assert bool(jnp.all(jnp.isfinite(logits)))

    # Numerical check against a HIGHEST-precision plain-JAX reference.  Tolerance
    # tightened vs. the previous version; the remaining margin only covers the
    # MXU's default f32 matmul precision inside the kernel.
    ref = jax.jit(lambda p, inp: _reference_forward(p, inp, CONFIG))(params, x)
    err = float(jnp.max(jnp.abs(logits - ref)))
    scale = float(jnp.max(jnp.abs(ref)))
    assert err <= 2e-2 + 1e-2 * scale, f"kernel/reference mismatch: err={err}, scale={scale}"

    print("KERNEL_OK")
</pallas_src>

<mosaic_0001>
module attributes {stable_mosaic.version = 11 : i64} {
  func.func @kernel(%arg0: memref<32x64xf32, #tpu.memory_space<vmem>>, %arg1: memref<1992x128xf32, #tpu.memory_space<vmem>>, %arg2: memref<2x10xf32, #tpu.memory_space<vmem>>) attributes {dimension_semantics = [], scalar_prefetch = 0 : i64, scratch_operands = 0 : i64, tpu.core_type = #tpu.core_type<tc>} {
    %c0 = arith.constant 0 : index
    %c0_0 = arith.constant 0 : index
    %0 = vector.load %arg0[%c0, %c0_0] : memref<32x64xf32, #tpu.memory_space<vmem>>, vector<32x64xf32>
    %c0_1 = arith.constant 0 : index
    %c0_2 = arith.constant 0 : index
    %1 = vector.load %arg1[%c0_1, %c0_2] : memref<1992x128xf32, #tpu.memory_space<vmem>>, vector<192x128xf32>
    %c192 = arith.constant 192 : index
    %c0_3 = arith.constant 0 : index
    %2 = vector.load %arg1[%c192, %c0_3] : memref<1992x128xf32, #tpu.memory_space<vmem>>, vector<1x128xf32>
    %c1_i32 = arith.constant 1 : i32
    %3 = tpu.dynamic_rotate %0 by %c1_i32 dim 0 : vector<32x64xf32>, i32 -> vector<32x64xf32>
    %4 = tpu.iota {dimensions = array<i32: 0>} : vector<32x1xi32>
    %c16_i32 = arith.constant 16 : i32
    %c0_i32 = arith.constant 0 : i32
    %5 = arith.cmpi eq, %c16_i32, %c0_i32 : i32
    %c1_i32_4 = arith.constant 1 : i32
    %6 = arith.select %5, %c1_i32_4, %c16_i32 : i32
    %7 = vector.broadcast %6 : i32 to vector<32x1xi32>
    %8 = arith.remsi %4, %7 : vector<32x1xi32>
    %c0_i32_5 = arith.constant 0 : i32
    %9 = vector.broadcast %c0_i32_5 : i32 to vector<32x1xi32>
    %10 = arith.cmpi ne, %8, %9 : vector<32x1xi32>
    %c0_i32_6 = arith.constant 0 : i32
    %11 = vector.broadcast %c0_i32_6 : i32 to vector<32x1xi32>
    %12 = arith.cmpi slt, %8, %11 : vector<32x1xi32>
    %c0_i32_7 = arith.constant 0 : i32
    %13 = arith.cmpi slt, %6, %c0_i32_7 : i32
    %14 = vector.broadcast %13 : i1 to vector<32x1xi1>
    %15 = vector.broadcast %14 : vector<32x1xi1> to vector<32x1xi1>
    %16 = arith.xori %12, %15 : vector<32x1xi1>
    %17 = arith.andi %16, %10 : vector<32x1xi1>
    %18 = vector.broadcast %6 : i32 to vector<32x1xi32>
    %19 = arith.addi %8, %18 : vector<32x1xi32>
    %20 = arith.select %17, %19, %8 : vector<32x1xi1>, vector<32x1xi32>
    %c-1_i32 = arith.constant -1 : i32
    %21 = vector.broadcast %c-1_i32 : i32 to vector<32x1xi32>
    %22 = arith.addi %20, %21 : vector<32x1xi32>
    %c0_i32_8 = arith.constant 0 : i32
    %23 = vector.broadcast %c0_i32_8 : i32 to vector<32x1xi32>
    %24 = arith.cmpi sge, %22, %23 : vector<32x1xi32>
    %c-1_i32_9 = arith.constant -1 : i32
    %25 = vector.broadcast %c-1_i32_9 : i32 to vector<32x1xi32>
    %26 = arith.addi %20, %25 : vector<32x1xi32>
    %c16_i32_10 = arith.constant 16 : i32
    %27 = vector.broadcast %c16_i32_10 : i32 to vector<32x1xi32>
    %28 = arith.cmpi slt, %26, %27 : vector<32x1xi32>
    %29 = arith.andi %24, %28 : vector<32x1xi1>
    %30 = arith.extui %29 : vector<32x1xi1> to vector<32x1xi32>
    %31 = arith.sitofp %30 : vector<32x1xi32> to vector<32x1xf32>
    %32 = vector.broadcast %31 : vector<32x1xf32> to vector<32x64xf32>
    %33 = arith.mulf %3, %32 : vector<32x64xf32>
    %c31_i32 = arith.constant 31 : i32
    %34 = tpu.dynamic_rotate %0 by %c31_i32 dim 0 : vector<32x64xf32>, i32 -> vector<32x64xf32>
    %35 = tpu.iota {dimensions = array<i32: 0>} : vector<32x1xi32>
    %c16_i32_11 = arith.constant 16 : i32
    %c0_i32_12 = arith.constant 0 : i32
    %36 = arith.cmpi eq, %c16_i32_11, %c0_i32_12 : i32
    %c1_i32_13 = arith.constant 1 : i32
    %37 = arith.select %36, %c1_i32_13, %c16_i32_11 : i32
    %38 = vector.broadcast %37 : i32 to vector<32x1xi32>
    %39 = arith.remsi %35, %38 : vector<32x1xi32>
    %c0_i32_14 = arith.constant 0 : i32
    %40 = vector.broadcast %c0_i32_14 : i32 to vector<32x1xi32>
    %41 = arith.cmpi ne, %39, %40 : vector<32x1xi32>
    %c0_i32_15 = arith.constant 0 : i32
    %42 = vector.broadcast %c0_i32_15 : i32 to vector<32x1xi32>
    %43 = arith.cmpi slt, %39, %42 : vector<32x1xi32>
    %c0_i32_16 = arith.constant 0 : i32
    %44 = arith.cmpi slt, %37, %c0_i32_16 : i32
    %45 = vector.broadcast %44 : i1 to vector<32x1xi1>
    %46 = vector.broadcast %45 : vector<32x1xi1> to vector<32x1xi1>
    %47 = arith.xori %43, %46 : vector<32x1xi1>
    %48 = arith.andi %47, %41 : vector<32x1xi1>
    %49 = vector.broadcast %37 : i32 to vector<32x1xi32>
    %50 = arith.addi %39, %49 : vector<32x1xi32>
    %51 = arith.select %48, %50, %39 : vector<32x1xi1>, vector<32x1xi32>
    %c1_i32_17 = arith.constant 1 : i32
    %52 = vector.broadcast %c1_i32_17 : i32 to vector<32x1xi32>
    %53 = arith.addi %51, %52 : vector<32x1xi32>
    %c0_i32_18 = arith.constant 0 : i32
    %54 = vector.broadcast %c0_i32_18 : i32 to vector<32x1xi32>
    %55 = arith.cmpi sge, %53, %54 : vector<32x1xi32>
    %c1_i32_19 = arith.constant 1 : i32
    %56 = vector.broadcast %c1_i32_19 : i32 to vector<32x1xi32>
    %57 = arith.addi %51, %56 : vector<32x1xi32>
    %c16_i32_20 = arith.constant 16 : i32
    %58 = vector.broadcast %c16_i32_20 : i32 to vector<32x1xi32>
    %59 = arith.cmpi slt, %57, %58 : vector<32x1xi32>
    %60 = arith.andi %55, %59 : vector<32x1xi1>
    %61 = arith.extui %60 : vector<32x1xi1> to vector<32x1xi32>
    %62 = arith.sitofp %61 : vector<32x1xi32> to vector<32x1xf32>
    %63 = vector.broadcast %62 : vector<32x1xf32> to vector<32x64xf32>
    %64 = arith.mulf %34, %63 : vector<32x64xf32>
    %65 = tpu.concatenate %33, %0, %64 in 1 : vector<32x64xf32>, vector<32x64xf32>, vector<32x64xf32> -> vector<32x192xf32>
    %cst = arith.constant dense<0.000000e+00> : vector<32x128xf32>
    %66 = tpu.matmul %65, %1, %cst {dimension_numbers = #tpu.dot_dimension_numbers<[1], [0], [0], [1], [0, 0, 1, 1], [], []>} : vector<32x192xf32>, vector<192x128xf32>, vector<32x128xf32> -> vector<32x128xf32>
    %67 = vector.broadcast %2 : vector<1x128xf32> to vector<32x128xf32>
    %68 = arith.addf %66, %67 : vector<32x128xf32>
    %cst_21 = arith.constant 0.000000e+00 : f32
    %69 = vector.broadcast %cst_21 : f32 to vector<32x128xf32>
    %70 = arith.maximumf %68, %69 : vector<32x128xf32>
    %c200 = arith.constant 200 : index
    %c0_22 = arith.constant 0 : index
    %71 = vector.load %arg1[%c200, %c0_22] : memref<1992x128xf32, #tpu.memory_space<vmem>>, vector<16x32xf32>
    %c216 = arith.constant 216 : index
    %c0_23 = arith.constant 0 : index
    %72 = vector.load %arg1[%c216, %c0_23] : memref<1992x128xf32, #tpu.memory_space<vmem>>, vector<128x64xf32>
    %c31_i32_24 = arith.constant 31 : i32
    %73 = tpu.dynamic_rotate %70 by %c31_i32_24 dim 0 : vector<32x128xf32>, i32 -> vector<32x128xf32>
    %74 = arith.maximumf %70, %73 : vector<32x128xf32>
    %cst_25 = arith.constant dense<0.000000e+00> : vector<16x128xf32>
    %75 = tpu.matmul %71, %74, %cst_25 {dimension_numbers = #tpu.dot_dimension_numbers<[1], [0], [0], [1], [0, 0, 1, 1], [], []>} : vector<16x32xf32>, vector<32x128xf32>, vector<16x128xf32> -> vector<16x128xf32>
    %c120_i32 = arith.constant 120 : i32
    %76 = tpu.dynamic_rotate %75 by %c120_i32 dim 1 : vector<16x128xf32>, i32 -> vector<16x128xf32>
    %77 = arith.maximumf %75, %76 : vector<16x128xf32>
    %cst_26 = arith.constant dense<0.000000e+00> : vector<16x64xf32>
    %78 = tpu.matmul %77, %72, %cst_26 {dimension_numbers = #tpu.dot_dimension_numbers<[1], [0], [0], [1], [0, 0, 1, 1], [], []>} : vector<16x128xf32>, vector<128x64xf32>, vector<16x64xf32> -> vector<16x64xf32>
    %c344 = arith.constant 344 : index
    %c0_27 = arith.constant 0 : index
    %79 = vector.load %arg1[%c344, %c0_27] : memref<1992x128xf32, #tpu.memory_space<vmem>>, vector<192x64xf32>
    %c536 = arith.constant 536 : index
    %c0_28 = arith.constant 0 : index
    %80 = vector.load %arg1[%c536, %c0_28] : memref<1992x128xf32, #tpu.memory_space<vmem>>, vector<1x64xf32>
    %c1_i32_29 = arith.constant 1 : i32
    %81 = tpu.dynamic_rotate %78 by %c1_i32_29 dim 0 : vector<16x64xf32>, i32 -> vector<16x64xf32>
    %82 = tpu.iota {dimensions = array<i32: 0>} : vector<16x1xi32>
    %c8_i32 = arith.constant 8 : i32
    %c0_i32_30 = arith.constant 0 : i32
    %83 = arith.cmpi eq, %c8_i32, %c0_i32_30 : i32
    %c1_i32_31 = arith.constant 1 : i32
    %84 = arith.select %83, %c1_i32_31, %c8_i32 : i32
    %85 = vector.broadcast %84 : i32 to vector<16x1xi32>
    %86 = arith.remsi %82, %85 : vector<16x1xi32>
    %c0_i32_32 = arith.constant 0 : i32
    %87 = vector.broadcast %c0_i32_32 : i32 to vector<16x1xi32>
    %88 = arith.cmpi ne, %86, %87 : vector<16x1xi32>
    %c0_i32_33 = arith.constant 0 : i32
    %89 = vector.broadcast %c0_i32_33 : i32 to vector<16x1xi32>
    %90 = arith.cmpi slt, %86, %89 : vector<16x1xi32>
    %c0_i32_34 = arith.constant 0 : i32
    %91 = arith.cmpi slt, %84, %c0_i32_34 : i32
    %92 = vector.broadcast %91 : i1 to vector<16x1xi1>
    %93 = vector.broadcast %92 : vector<16x1xi1> to vector<16x1xi1>
    %94 = arith.xori %90, %93 : vector<16x1xi1>
    %95 = arith.andi %94, %88 : vector<16x1xi1>
    %96 = vector.broadcast %84 : i32 to vector<16x1xi32>
    %97 = arith.addi %86, %96 : vector<16x1xi32>
    %98 = arith.select %95, %97, %86 : vector<16x1xi1>, vector<16x1xi32>
    %c-1_i32_35 = arith.constant -1 : i32
    %99 = vector.broadcast %c-1_i32_35 : i32 to vector<16x1xi32>
    %100 = arith.addi %98, %99 : vector<16x1xi32>
    %c0_i32_36 = arith.constant 0 : i32
    %101 = vector.broadcast %c0_i32_36 : i32 to vector<16x1xi32>
    %102 = arith.cmpi sge, %100, %101 : vector<16x1xi32>
    %c-1_i32_37 = arith.constant -1 : i32
    %103 = vector.broadcast %c-1_i32_37 : i32 to vector<16x1xi32>
    %104 = arith.addi %98, %103 : vector<16x1xi32>
    %c8_i32_38 = arith.constant 8 : i32
    %105 = vector.broadcast %c8_i32_38 : i32 to vector<16x1xi32>
    %106 = arith.cmpi slt, %104, %105 : vector<16x1xi32>
    %107 = arith.andi %102, %106 : vector<16x1xi1>
    %108 = arith.extui %107 : vector<16x1xi1> to vector<16x1xi32>
    %109 = arith.sitofp %108 : vector<16x1xi32> to vector<16x1xf32>
    %110 = vector.broadcast %109 : vector<16x1xf32> to vector<16x64xf32>
    %111 = arith.mulf %81, %110 : vector<16x64xf32>
    %c15_i32 = arith.constant 15 : i32
    %112 = tpu.dynamic_rotate %78 by %c15_i32 dim 0 : vector<16x64xf32>, i32 -> vector<16x64xf32>
    %113 = tpu.iota {dimensions = array<i32: 0>} : vector<16x1xi32>
    %c8_i32_39 = arith.constant 8 : i32
    %c0_i32_40 = arith.constant 0 : i32
    %114 = arith.cmpi eq, %c8_i32_39, %c0_i32_40 : i32
    %c1_i32_41 = arith.constant 1 : i32
    %115 = arith.select %114, %c1_i32_41, %c8_i32_39 : i32
    %116 = vector.broadcast %115 : i32 to vector<16x1xi32>
    %117 = arith.remsi %113, %116 : vector<16x1xi32>
    %c0_i32_42 = arith.constant 0 : i32
    %118 = vector.broadcast %c0_i32_42 : i32 to vector<16x1xi32>
    %119 = arith.cmpi ne, %117, %118 : vector<16x1xi32>
    %c0_i32_43 = arith.constant 0 : i32
    %120 = vector.broadcast %c0_i32_43 : i32 to vector<16x1xi32>
    %121 = arith.cmpi slt, %117, %120 : vector<16x1xi32>
    %c0_i32_44 = arith.constant 0 : i32
    %122 = arith.cmpi slt, %115, %c0_i32_44 : i32
    %123 = vector.broadcast %122 : i1 to vector<16x1xi1>
    %124 = vector.broadcast %123 : vector<16x1xi1> to vector<16x1xi1>
    %125 = arith.xori %121, %124 : vector<16x1xi1>
    %126 = arith.andi %125, %119 : vector<16x1xi1>
    %127 = vector.broadcast %115 : i32 to vector<16x1xi32>
    %128 = arith.addi %117, %127 : vector<16x1xi32>
    %129 = arith.select %126, %128, %117 : vector<16x1xi1>, vector<16x1xi32>
    %c1_i32_45 = arith.constant 1 : i32
    %130 = vector.broadcast %c1_i32_45 : i32 to vector<16x1xi32>
    %131 = arith.addi %129, %130 : vector<16x1xi32>
    %c0_i32_46 = arith.constant 0 : i32
    %132 = vector.broadcast %c0_i32_46 : i32 to vector<16x1xi32>
    %133 = arith.cmpi sge, %131, %132 : vector<16x1xi32>
    %c1_i32_47 = arith.constant 1 : i32
    %134 = vector.broadcast %c1_i32_47 : i32 to vector<16x1xi32>
    %135 = arith.addi %129, %134 : vector<16x1xi32>
    %c8_i32_48 = arith.constant 8 : i32
    %136 = vector.broadcast %c8_i32_48 : i32 to vector<16x1xi32>
    %137 = arith.cmpi slt, %135, %136 : vector<16x1xi32>
    %138 = arith.andi %133, %137 : vector<16x1xi1>
    %139 = arith.extui %138 : vector<16x1xi1> to vector<16x1xi32>
    %140 = arith.sitofp %139 : vector<16x1xi32> to vector<16x1xf32>
    %141 = vector.broadcast %140 : vector<16x1xf32> to vector<16x64xf32>
    %142 = arith.mulf %112, %141 : vector<16x64xf32>
    %143 = tpu.concatenate %111, %78, %142 in 1 : vector<16x64xf32>, vector<16x64xf32>, vector<16x64xf32> -> vector<16x192xf32>
    %cst_49 = arith.constant dense<0.000000e+00> : vector<16x64xf32>
    %144 = tpu.matmul %143, %79, %cst_49 {dimension_numbers = #tpu.dot_dimension_numbers<[1], [0], [0], [1], [0, 0, 1, 1], [], []>} : vector<16x192xf32>, vector<192x64xf32>, vector<16x64xf32> -> vector<16x64xf32>
    %145 = vector.broadcast %80 : vector<1x64xf32> to vector<16x64xf32>
    %146 = arith.addf %144, %145 : vector<16x64xf32>
    %cst_50 = arith.constant 0.000000e+00 : f32
    %147 = vector.broadcast %cst_50 : f32 to vector<16x64xf32>
    %148 = arith.maximumf %146, %147 : vector<16x64xf32>
    %c544 = arith.constant 544 : index
    %c0_51 = arith.constant 0 : index
    %149 = vector.load %arg1[%c544, %c0_51] : memref<1992x128xf32, #tpu.memory_space<vmem>>, vector<192x128xf32>
    %c736 = arith.constant 736 : index
    %c0_52 = arith.constant 0 : index
    %150 = vector.load %arg1[%c736, %c0_52] : memref<1992x128xf32, #tpu.memory_space<vmem>>, vector<1x128xf32>
    %c1_i32_53 = arith.constant 1 : i32
    %151 = tpu.dynamic_rotate %148 by %c1_i32_53 dim 0 : vector<16x64xf32>, i32 -> vector<16x64xf32>
    %152 = vector.broadcast %109 : vector<16x1xf32> to vector<16x64xf32>
    %153 = arith.mulf %151, %152 : vector<16x64xf32>
    %c15_i32_54 = arith.constant 15 : i32
    %154 = tpu.dynamic_rotate %148 by %c15_i32_54 dim 0 : vector<16x64xf32>, i32 -> vector<16x64xf32>
    %155 = vector.broadcast %140 : vector<16x1xf32> to vector<16x64xf32>
    %156 = arith.mulf %154, %155 : vector<16x64xf32>
    %157 = tpu.concatenate %153, %148, %156 in 1 : vector<16x64xf32>, vector<16x64xf32>, vector<16x64xf32> -> vector<16x192xf32>
    %cst_55 = arith.constant dense<0.000000e+00> : vector<16x128xf32>
    %158 = tpu.matmul %157, %149, %cst_55 {dimension_numbers = #tpu.dot_dimension_numbers<[1], [0], [0], [1], [0, 0, 1, 1], [], []>} : vector<16x192xf32>, vector<192x128xf32>, vector<16x128xf32> -> vector<16x128xf32>
    %159 = vector.broadcast %150 : vector<1x128xf32> to vector<16x128xf32>
    %160 = arith.addf %158, %159 : vector<16x128xf32>
    %c744 = arith.constant 744 : index
    %c0_56 = arith.constant 0 : index
    %161 = vector.load %arg1[%c744, %c0_56] : memref<1992x128xf32, #tpu.memory_space<vmem>>, vector<64x128xf32>
    %c808 = arith.constant 808 : index
    %c0_57 = arith.constant 0 : index
    %162 = vector.load %arg1[%c808, %c0_57] : memref<1992x128xf32, #tpu.memory_space<vmem>>, vector<1x128xf32>
    %cst_58 = arith.constant dense<0.000000e+00> : vector<16x128xf32>
    %163 = tpu.matmul %78, %161, %cst_58 {dimension_numbers = #tpu.dot_dimension_numbers<[1], [0], [0], [1], [0, 0, 1, 1], [], []>} : vector<16x64xf32>, vector<64x128xf32>, vector<16x128xf32> -> vector<16x128xf32>
    %164 = vector.broadcast %162 : vector<1x128xf32> to vector<16x128xf32>
    %165 = arith.addf %163, %164 : vector<16x128xf32>
    %166 = arith.addf %160, %165 : vector<16x128xf32>
    %cst_59 = arith.constant 0.000000e+00 : f32
    %167 = vector.broadcast %cst_59 : f32 to vector<16x128xf32>
    %168 = arith.maximumf %166, %167 : vector<16x128xf32>
    %c816 = arith.constant 816 : index
    %c0_60 = arith.constant 0 : index
    %169 = vector.load %arg1[%c816, %c0_60] : memref<1992x128xf32, #tpu.memory_space<vmem>>, vector<384x128xf32>
    %c1200 = arith.constant 1200 : index
    %c0_61 = arith.constant 0 : index
    %170 = vector.load %arg1[%c1200, %c0_61] : memref<1992x128xf32, #tpu.memory_space<vmem>>, vector<1x128xf32>
    %c1_i32_62 = arith.constant 1 : i32
    %171 = tpu.dynamic_rotate %168 by %c1_i32_62 dim 0 : vector<16x128xf32>, i32 -> vector<16x128xf32>
    %172 = vector.broadcast %109 : vector<16x1xf32> to vector<16x128xf32>
    %173 = arith.mulf %171, %172 : vector<16x128xf32>
    %c15_i32_63 = arith.constant 15 : i32
    %174 = tpu.dynamic_rotate %168 by %c15_i32_63 dim 0 : vector<16x128xf32>, i32 -> vector<16x128xf32>
    %175 = vector.broadcast %140 : vector<16x1xf32> to vector<16x128xf32>
    %176 = arith.mulf %174, %175 : vector<16x128xf32>
    %177 = tpu.concatenate %173, %168, %176 in 1 : vector<16x128xf32>, vector<16x128xf32>, vector<16x128xf32> -> vector<16x384xf32>
    %cst_64 = arith.constant dense<0.000000e+00> : vector<16x128xf32>
    %178 = tpu.matmul %177, %169, %cst_64 {dimension_numbers = #tpu.dot_dimension_numbers<[1], [0], [0], [1], [0, 0, 1, 1], [], []>} : vector<16x384xf32>, vector<384x128xf32>, vector<16x128xf32> -> vector<16x128xf32>
    %179 = vector.broadcast %170 : vector<1x128xf32> to vector<16x128xf32>
    %180 = arith.addf %178, %179 : vector<16x128xf32>
    %cst_65 = arith.constant 0.000000e+00 : f32
    %181 = vector.broadcast %cst_65 : f32 to vector<16x128xf32>
    %182 = arith.maximumf %180, %181 : vector<16x128xf32>
    %c1208 = arith.constant 1208 : index
    %c0_66 = arith.constant 0 : index
    %183 = vector.load %arg1[%c1208, %c0_66] : memref<1992x128xf32, #tpu.memory_space<vmem>>, vector<384x128xf32>
    %c1592 = arith.constant 1592 : index
    %c0_67 = arith.constant 0 : index
    %184 = vector.load %arg1[%c1592, %c0_67] : memref<1992x128xf32, #tpu.memory_space<vmem>>, vector<1x128xf32>
    %c1_i32_68 = arith.constant 1 : i32
    %185 = tpu.dynamic_rotate %182 by %c1_i32_68 dim 0 : vector<16x128xf32>, i32 -> vector<16x128xf32>
    %186 = vector.broadcast %109 : vector<16x1xf32> to vector<16x128xf32>
    %187 = arith.mulf %185, %186 : vector<16x128xf32>
    %c15_i32_69 = arith.constant 15 : i32
    %188 = tpu.dynamic_rotate %182 by %c15_i32_69 dim 0 : vector<16x128xf32>, i32 -> vector<16x128xf32>
    %189 = vector.broadcast %140 : vector<16x1xf32> to vector<16x128xf32>
    %190 = arith.mulf %188, %189 : vector<16x128xf32>
    %191 = tpu.concatenate %187, %182, %190 in 1 : vector<16x128xf32>, vector<16x128xf32>, vector<16x128xf32> -> vector<16x384xf32>
    %cst_70 = arith.constant dense<0.000000e+00> : vector<16x128xf32>
    %192 = tpu.matmul %191, %183, %cst_70 {dimension_numbers = #tpu.dot_dimension_numbers<[1], [0], [0], [1], [0, 0, 1, 1], [], []>} : vector<16x384xf32>, vector<384x128xf32>, vector<16x128xf32> -> vector<16x128xf32>
    %193 = vector.broadcast %184 : vector<1x128xf32> to vector<16x128xf32>
    %194 = arith.addf %192, %193 : vector<16x128xf32>
    %195 = arith.addf %194, %168 : vector<16x128xf32>
    %cst_71 = arith.constant 0.000000e+00 : f32
    %196 = vector.broadcast %cst_71 : f32 to vector<16x128xf32>
    %197 = arith.maximumf %195, %196 : vector<16x128xf32>
    %c1600 = arith.constant 1600 : index
    %c0_72 = arith.constant 0 : index
    %198 = vector.load %arg1[%c1600, %c0_72] : memref<1992x128xf32, #tpu.memory_space<vmem>>, vector<8x16xf32>
    %c1608 = arith.constant 1608 : index
    %c0_73 = arith.constant 0 : index
    %199 = vector.load %arg1[%c1608, %c0_73] : memref<1992x128xf32, #tpu.memory_space<vmem>>, vector<128x64xf32>
    %c15_i32_74 = arith.constant 15 : i32
    %200 = tpu.dynamic_rotate %197 by %c15_i32_74 dim 0 : vector<16x128xf32>, i32 -> vector<16x128xf32>
    %201 = arith.maximumf %197, %200 : vector<16x128xf32>
    %cst_75 = arith.constant dense<0.000000e+00> : vector<8x128xf32>
    %202 = tpu.matmul %198, %201, %cst_75 {dimension_numbers = #tpu.dot_dimension_numbers<[1], [0], [0], [1], [0, 0, 1, 1], [], []>} : vector<8x16xf32>, vector<16x128xf32>, vector<8x128xf32> -> vector<8x128xf32>
    %c112_i32 = arith.constant 112 : i32
    %203 = tpu.dynamic_rotate %202 by %c112_i32 dim 1 : vector<8x128xf32>, i32 -> vector<8x128xf32>
    %204 = arith.maximumf %202, %203 : vector<8x128xf32>
    %cst_76 = arith.constant dense<0.000000e+00> : vector<8x64xf32>
    %205 = tpu.matmul %204, %199, %cst_76 {dimension_numbers = #tpu.dot_dimension_numbers<[1], [0], [0], [1], [0, 0, 1, 1], [], []>} : vector<8x128xf32>, vector<128x64xf32>, vector<8x64xf32> -> vector<8x64xf32>
    %c1736 = arith.constant 1736 : index
    %c0_77 = arith.constant 0 : index
    %206 = vector.load %arg1[%c1736, %c0_77] : memref<1992x128xf32, #tpu.memory_space<vmem>>, vector<64x128xf32>
    %c1800 = arith.constant 1800 : index
    %c0_78 = arith.constant 0 : index
    %207 = vector.load %arg1[%c1800, %c0_78] : memref<1992x128xf32, #tpu.memory_space<vmem>>, vector<8x128xf32>
    %c1808 = arith.constant 1808 : index
    %c0_79 = arith.constant 0 : index
    %208 = vector.load %arg1[%c1808, %c0_79] : memref<1992x128xf32, #tpu.memory_space<vmem>>, vector<128x32xf32>
    %c1936 = arith.constant 1936 : index
    %c0_80 = arith.constant 0 : index
    %209 = vector.load %arg1[%c1936, %c0_80] : memref<1992x128xf32, #tpu.memory_space<vmem>>, vector<2x8xf32>
    %c1944 = arith.constant 1944 : index
    %c0_81 = arith.constant 0 : index
    %210 = vector.load %arg1[%c1944, %c0_81] : memref<1992x128xf32, #tpu.memory_space<vmem>>, vector<1x32xf32>
    %cst_82 = arith.constant dense<0.000000e+00> : vector<8x128xf32>
    %211 = tpu.matmul %205, %206, %cst_82 {dimension_numbers = #tpu.dot_dimension_numbers<[1], [0], [0], [1], [0, 0, 1, 1], [], []>} : vector<8x64xf32>, vector<64x128xf32>, vector<8x128xf32> -> vector<8x128xf32>
    %212 = arith.mulf %211, %207 : vector<8x128xf32>
    %cst_83 = arith.constant dense<0.000000e+00> : vector<8x32xf32>
    %213 = tpu.matmul %212, %208, %cst_83 {dimension_numbers = #tpu.dot_dimension_numbers<[1], [0], [0], [1], [0, 0, 1, 1], [], []>} : vector<8x128xf32>, vector<128x32xf32>, vector<8x32xf32> -> vector<8x32xf32>
    %cst_84 = arith.constant dense<0.000000e+00> : vector<2x32xf32>
    %214 = tpu.matmul %209, %213, %cst_84 {dimension_numbers = #tpu.dot_dimension_numbers<[1], [0], [0], [1], [0, 0, 1, 1], [], []>} : vector<2x8xf32>, vector<8x32xf32>, vector<2x32xf32> -> vector<2x32xf32>
    %215 = vector.broadcast %210 : vector<1x32xf32> to vector<2x32xf32>
    %216 = arith.addf %214, %215 : vector<2x32xf32>
    %cst_85 = arith.constant 0.000000e+00 : f32
    %217 = vector.broadcast %cst_85 : f32 to vector<2x32xf32>
    %218 = arith.maximumf %216, %217 : vector<2x32xf32>
    %c1952 = arith.constant 1952 : index
    %c0_86 = arith.constant 0 : index
    %219 = vector.load %arg1[%c1952, %c0_86] : memref<1992x128xf32, #tpu.memory_space<vmem>>, vector<32x10xf32>
    %c1984 = arith.constant 1984 : index
    %c0_87 = arith.constant 0 : index
    %220 = vector.load %arg1[%c1984, %c0_87] : memref<1992x128xf32, #tpu.memory_space<vmem>>, vector<1x10xf32>
    %cst_88 = arith.constant dense<0.000000e+00> : vector<2x10xf32>
    %221 = tpu.matmul %218, %219, %cst_88 {dimension_numbers = #tpu.dot_dimension_numbers<[1], [0], [0], [1], [0, 0, 1, 1], [], []>} : vector<2x32xf32>, vector<32x10xf32>, vector<2x10xf32> -> vector<2x10xf32>
    %222 = vector.broadcast %220 : vector<1x10xf32> to vector<2x10xf32>
    %223 = arith.addf %221, %222 : vector<2x10xf32>
    %c0_89 = arith.constant 0 : index
    %c0_90 = arith.constant 0 : index
    %224 = vector.load %arg2[%c0_89, %c0_90] : memref<2x10xf32, #tpu.memory_space<vmem>>, vector<2x10xf32>
    tpu.vector_store %arg2[%c0_89, %c0_90], %223 {strides = array<i32>} : memref<2x10xf32, #tpu.memory_space<vmem>>, vector<2x10xf32>,
    return
  }
}

</mosaic_0001>

<bundles_post_ra>
// kernel: _lambda_.1
= control target key start
LH: loop header
LB: loop body
LE: loop exit
PB: predicated region body
PF: predicated region fallthrough
CT: control target
= control target key end

     0   :  { %7 = vsyncpa [#allocation3], 0  ;;  %s1449_s0 = inlined_call_operand.vmem [shape: f32[32,64], index: 0, kind: input, shape index: {}]   ;;  %s1450_s1 = inlined_call_operand.hbm [shape: f32[1992,128], index: 1, kind: input, shape index: {}]   ;;  %s1451_s2 = inlined_call_operand.hbm [shape: f32[2,10], index: 2, kind: output, shape index: {}]  }
   0x1   :  { %8 = vsyncpa [#allocation4], 0  ;;  %s15_s11 = sshll.u32 %s1450_s1, 4  ;;  %s1235_s12 = smov [#allocation2]   ;;  %s16_s11 = int_to_ptr.hbm [resolvable:$true] %s15_s11 }
   0x2   :  { %s17_s13 = sshll.u32 %s1235_s12, 4  ;;  %s1236_s14 = smov 128   ;;  %s18_s13 = int_to_ptr.vmem [resolvable:$true] %s17_s13 }
   0x3   :  { %s1237_s15 = smov 8  }
   0x4   :  { %23 = dma.hbm_to_vmem [thread:$0]  %s16_s11, 31872, %s18_s13, [#allocation3], %s1236_s14, %s1236_s14, %s1237_s15  }
   0x5   :  { %1231 = dma.done.wait [#allocation3], 31872  }
   0x6   :  { %1232 = vsyncadd [#allocation3], 4294935424  ;;  %v1264_v0 = vld [vmem:[%s1449_s0] sm:$0xff]  ;;  %v1269_v1 = vld [vmem:[%s1449_s0 + $0x10] sm:$0xff]  ;;  %s1238_s1 = smov 64   ;;  %v61_v25 = vlaneseq  ;;  %vm200_vm2 = vcmask 523264  }
   0x7   :  { %188 = vrot.lane.b32.xlu0 %v1264_v0, %s1238_s1  ;;  %192 = vrot.lane.b32.xlu1 %v1269_v1, %s1238_s1  ;;  %v47_v2 = vld [vmem:[#allocation2 + $0x78] sm:$0xff]  ;;  %v46_v3 = vld [vmem:[#allocation2 + $0x70] sm:$0xff]  ;;  %v45_v4 = vld [vmem:[#allocation2 + $0x68] sm:$0xff]  ;;  %v57_v26 = vrot.slane %v1264_v0, 7  ;;  %v147_v29 = vrot.slane %v1264_v0, 1  ;;  %v149_v39 = vrot.slane %v1269_v1, 1 }
   0x8   :  { %218 = vmatpush.msra.mxu0 %v47_v2  ;;  %v44_v5 = vld [vmem:[#allocation2 + $0x60] sm:$0xff]  ;;  %v55_v6 = vld [vmem:[#allocation2 + $0xb8] sm:$0xff]  ;;  %v1278_v7 = vld [vmem:[%s1449_s0 + $0x8] sm:$0xff]  ;;  %v1291_v28 = vshrl.u32 %v61_v25, 7  ;;  %v59_v40 = vrot.slane %v1269_v1, 7  ;;  %v1239_v44 = vmov 0.0  }
   0x9   :  { %v1283_v8 = vld [vmem:[%s1449_s0 + $0x18] sm:$0xff]  ;;  %255 = vmatpush.msra.mxu1 %v55_v6  ;;  %v54_v9 = vld [vmem:[#allocation2 + $0xb0] sm:$0xff]  ;;  %v53_v11 = vld [vmem:[#allocation2 + $0xa8] sm:$0xff]  ;;  %v148_v30 = vrot.slane %v1278_v7, 1  ;;  %v58_v37 = vrot.slane %v1278_v7, 7  ;;  %vm310_vm7 = vcmask 261120  }
   0xa   :  { %219 = vmatpush.msra.mxu0 %v46_v3  ;;  %v43_v10 = vld [vmem:[#allocation2 + $0x58] sm:$0xff]  ;;  %v42_v12 = vld [vmem:[#allocation2 + $0x50] sm:$0xff]  ;;  %v52_v13 = vld [vmem:[#allocation2 + $0xa0] sm:$0xff]  ;;  %v60_v27 = vrot.slane %v1283_v8, 7  ;;  %vm63_vm0 = vcmp.lt.s32.totalorder %v1291_v28, 1  ;;  %vm151_vm1 = vcmp.lt.s32.totalorder %v1291_v28, 7 }
   0xb   :  { %256 = vmatpush.msra.mxu1 %v54_v9  ;;  %v41_v14 = vld [vmem:[#allocation2 + $0x48] sm:$0xff]  ;;  %v51_v15 = vld [vmem:[#allocation2 + $0x98] sm:$0xff]  ;;  %v40_v16 = vld [vmem:[#allocation2 + $0x40] sm:$0xff]  ;;  %v154_v35 = vsel %vm151_vm1, %v147_v29, %v148_v30  ;;  %v1302_v36 = vadd.s32 8, %v1291_v28  ;;  %v66_v42 = vsel %vm63_vm0, %v57_v26, %v58_v37  ;;  %v153_v43 = vsel %vm151_vm1, %v148_v30, %v149_v39  ;;  %s1240_s0 = smov 120   ;;  %s1241_s24 = smov 112  }
   0xc   :  { %220 = vmatpush.msra.mxu0 %v45_v4  ;;  %v50_v17 = vld [vmem:[#allocation2 + $0x90] sm:$0xff]  ;;  %v39_v18 = vld [vmem:[#allocation2 + $0x38] sm:$0xff]  ;;  %v37_v20 = vld [vmem:[#allocation2 + $0x28] sm:$0xff]  ;;  %v67_v31 = vsel %vm63_vm0, %v60_v27, %v57_v26  ;;  %v65_v47 = vsel %vm63_vm0, %v58_v37, %v59_v40  ;;  %v150_v48 = vrot.slane %v1283_v8, 1  ;;  %v75_v49 = vand.u32 15, %v1291_v28  ;;  %s1242_s25 = smov [#allocation5]  }
   0xd   :  { %257 = vmatpush.msra.mxu1 %v53_v11  ;;  %v38_v19 = vld [vmem:[#allocation2 + $0x30] sm:$0xff]  ;;  %v36_v21 = vld [vmem:[#allocation2 + $0x20] sm:$0xff]  ;;  %v35_v22 = vld [vmem:[#allocation2 + $0x18] sm:$0xff]  ;;  %v82_v38 = vand.u32 15, %v1302_v36  ;;  %v64_v51 = vsel %vm63_vm0, %v59_v40, %v60_v27  ;;  %v70_v52 = vadd.s32 24, %v1291_v28  ;;  %v69_v56 = vadd.s32 16, %v1291_v28 }
   0xe   :  { %221 = vmatpush.msra.mxu0 %v44_v5  ;;  %v34_v23 = vld [vmem:[#allocation2 + $0x10] sm:$0xff]  ;;  %v33_v24 = vld [vmem:[#allocation2 + $0x8] sm:$0xff]  ;;  %v32_v32 = vld [vmem:[#allocation2] sm:$0xff]  ;;  %v152_v50 = vsel %vm151_vm1, %v149_v39, %v150_v48  ;;  %v119_v53 = vadd.s32 4294967295, %v75_v49  ;;  %v155_v57 = vsel %vm151_vm1, %v150_v48, %v147_v29  ;;  %vm951_vm12 = vcmask 130048   ;;  %s1131_s26 = sshll.u32 %s1242_s25, 4  ;;  %s1132_s26 = int_to_ptr.vmem [resolvable:$true] %s1131_s26 }
   0xf   :  { %190 = vrot.lane.b32.xlu0 %v1278_v7, %s1238_s1  ;;  %194 = vrot.lane.b32.xlu1 %v1283_v8, %s1238_s1  ;;  %v49_v33 = vld [vmem:[#allocation2 + $0x88] sm:$0xff]  ;;  %v48_v34 = vld [vmem:[#allocation2 + $0x80] sm:$0xff]  ;;  %v157_v41 = vadd.s32 1, %v82_v38  ;;  %v96_v54 = vand.u32 15, %v70_v52  ;;  %v89_v62 = vand.u32 15, %v69_v56  ;;  %v297_v48 = vld [vmem:[#allocation2 + $0x150] sm:$0xff] }
  0x10   :  { %222 = vmatpush.msra.mxu0 %v43_v10  ;;  %258 = vmatpush.msra.mxu1 %v52_v13  ;;  %vm123_vm4 = vcmp.ge.s32.totalorder %v119_v53, 0  ;;  %v296_v49 = vld [vmem:[#allocation2 + $0x148] sm:$0xff]  ;;  %v293_v52 = vld [vmem:[#allocation2 + $0x130] sm:$0xff]  ;;  %vm1070_vm13 = vcmask 64512   ;;  %s1133_s29 = sshll.u32 %s1451_s2, 4  ;;  %vm1124_vm14 = vcmask 74752   ;;  %s1134_s29 = int_to_ptr.hbm [resolvable:$true] %s1133_s29 }
  0x11   :  { %vm165_vm3 = vcmp.lt.s32.totalorder %v157_v41, 16  ;;  %v159_v55 = vadd.s32 1, %v96_v54  ;;  %v1143_v59 = vsel %vm123_vm4, 1.0, %v1239_v44  ;;  %v121_v1 = vadd.s32 4294967295, %v89_v62  ;;  %346 = vmatpush.msra.mxu3 %v297_v48  ;;  %v292_v53 = vld [vmem:[#allocation2 + $0x128] sm:$0xff]  ;;  %v291_v54 = vld [vmem:[#allocation2 + $0x120] sm:$0xff] }
  0x12   :  { %223 = vmatpush.msra.mxu0 %v42_v12  ;;  %259 = vmatpush.msra.mxu1 %v51_v15  ;;  %v1145_v45 = vsel %vm165_vm3, 1.0, %v1239_v44  ;;  %v143_v61 = vmul.f32 %v1143_v59, %v67_v31  ;;  %v1175_v15 = vld [vmem:[#allocation2 + $0xc0] ss:$0 sm:$0xff]  ;;  %v289_v56 = vld [vmem:[#allocation2 + $0x110] sm:$0xff]  ;;  %v286_v59 = vld [vmem:[#allocation2 + $0xf8] sm:$0xff] }
  0x13   :  { %v181_v46 = vmul.f32 %v1145_v45, %v153_v43  ;;  %vm167_vm5 = vcmp.lt.s32.totalorder %v159_v55, 16  ;;  %vm125_vm6 = vcmp.ge.s32.totalorder %v121_v1, 0  ;;  %347 = vmatpush.msra.mxu3 %v296_v49  ;;  %v290_v55 = vld [vmem:[#allocation2 + $0x118] sm:$0xff]  ;;  %v284_v62 = vld [vmem:[#allocation2 + $0xe8] sm:$0xff]  ;;  %v624_v48 = vld [vmem:[#allocation2 + $0x310] sm:$0xff] }
  0x14   :  { %224 = vmatpush.msra.mxu0 %v41_v14  ;;  %260 = vmatpush.msra.mxu1 %v50_v17  ;;  %v1146_v58 = vsel %vm167_vm5, 1.0, %v1239_v44  ;;  %v1144_v3 = vsel %vm125_vm6, 1.0, %v1239_v44  ;;  %v282_v1 = vld [vmem:[#allocation2 + $0xd8] sm:$0xff]  ;;  %v623_v49 = vld [vmem:[#allocation2 + $0x308] sm:$0xff] }
  0x15   :  { %v183_v60 = vmul.f32 %v1146_v58, %v155_v57  ;;  %v145_v6 = vmul.f32 %v1144_v3, %v65_v47  ;;  %v281_v47 = vld [vmem:[#allocation2 + $0xd0] sm:$0xff]  ;;  %v288_v57 = vld [vmem:[#allocation2 + $0x108] sm:$0xff]  ;;  %v287_v58 = vld [vmem:[#allocation2 + $0x100] sm:$0xff] }
  0x16   :  { %225 = vmatpush.msra.mxu0 %v40_v16  ;;  %261 = vmatpush.msra.mxu1 %v49_v33 }
  0x18   :  { %226 = vmatpush.msra.mxu0 %v39_v18  ;;  %262 = vmatpush.msra.mxu1 %v48_v34 }
  0x19   :  { %1147 = vmatmul.msk.f32.vlgmr.msra.gmra.mxu1 %vm200_vm2, %v154_v35 }
  0x1a   :  { %227 = vmatpush.msra.mxu0 %v38_v19 }
  0x1c   :  { %228 = vmatpush.msra.mxu0 %v37_v20 }
  0x1e   :  { %229 = vmatpush.msra.mxu0 %v36_v21 }
  0x20   :  { %230 = vmatpush.msra.mxu0 %v35_v22 }
  0x21   :  { %1148 = vmatmul.msk.f32.gmra.mxu1 %vm200_vm2, %v181_v46  ;;  %v280_v46 = vld [vmem:[#allocation2 + $0xc8] sm:$0xff] }
  0x22   :  { %231 = vmatpush.msra.mxu0 %v34_v23 }
  0x24   :  { %232 = vmatpush.msra.mxu0 %v33_v24 }
  0x26   :  { %233 = vmatpush.msra.mxu0 %v32_v32 }
  0x29   :  { %1149 = vmatmul.msk.f32.gmra.mxu1 %vm200_vm2, %v152_v50  ;;  %v295_v50 = vld [vmem:[#allocation2 + $0x140] sm:$0xff] }
  0x2a   :  { %348 = vmatpush.msra.mxu3 %v295_v50  ;;  %v622_v50 = vld [vmem:[#allocation2 + $0x300] sm:$0xff] }
  0x31   :  { %1150 = vmatmul.msk.f32.gmra.mxu1 %vm200_vm2, %v183_v60  ;;  %v285_v60 = vld [vmem:[#allocation2 + $0xf0] sm:$0xff] }
  0x79   :  { %v189_v63 = vpop.permute.xlu0 %188  ;;  %v193_v5 = vpop.permute.xlu1 %192 }
  0x7a   :  { %v201_v0 = vsel %vm200_vm2, %v143_v61, %v189_v63  ;;  %v203_v7 = vsel %vm200_vm2, %v145_v6, %v193_v5  ;;  %v283_v63 = vld [vmem:[#allocation2 + $0xe0] sm:$0xff] }
  0x7b   :  { %234 = vmatmul.f32.vlgmr.msra.gmra.mxu0 %v201_v0 }
  0x81   :  { %v191_v2 = vpop.permute.xlu0 %190  ;;  %v195_v8 = vpop.permute.xlu1 %194 }
  0x82   :  { %v202_v4 = vsel %vm200_vm2, %v66_v42, %v191_v2  ;;  %v204_v9 = vsel %vm200_vm2, %v64_v51, %v195_v8  ;;  %v294_v51 = vld [vmem:[#allocation2 + $0x138] sm:$0xff]  ;;  %v392_v2 = vld [vmem:[#allocation2 + $0x210] sm:$0xff]  ;;  %v390_v8 = vld [vmem:[#allocation2 + $0x200] sm:$0xff] }
  0x83   :  { %237 = vmatmul.f32.gmra.mxu0 %v202_v4  ;;  %349 = vmatpush.msra.mxu3 %v294_v51  ;;  %v621_v51 = vld [vmem:[#allocation2 + $0x2f8] sm:$0xff] }
  0x84   :  { %502 = vmatpush.msrb.mxu1 %v392_v2 }
  0x85   :  { %350 = vmatpush.msra.mxu3 %v293_v52  ;;  %v620_v52 = vld [vmem:[#allocation2 + $0x2f0] sm:$0xff] }
  0x87   :  { %351 = vmatpush.msra.mxu3 %v292_v53  ;;  %v619_v53 = vld [vmem:[#allocation2 + $0x2e8] sm:$0xff] }
  0x89   :  { %352 = vmatpush.msra.mxu3 %v291_v54 }
  0x8b   :  { %240 = vmatmul.f32.gmra.mxu0 %v203_v7  ;;  %353 = vmatpush.msra.mxu3 %v290_v55  ;;  %v391_v7 = vld [vmem:[#allocation2 + $0x208] sm:$0xff] }
  0x8c   :  { %503 = vmatpush.msrb.mxu1 %v391_v7  ;;  %v539_v7 = vld [vmem:[#allocation2 + $0x2c0] sm:$0xff] }
  0x8d   :  { %354 = vmatpush.msra.mxu3 %v289_v56 }
  0x8e   :  { %504 = vmatpush.msrb.mxu1 %v390_v8  ;;  %v537_v8 = vld [vmem:[#allocation2 + $0x2b0] sm:$0xff] }
  0x8f   :  { %355 = vmatpush.msra.mxu3 %v288_v57 }
  0x91   :  { %356 = vmatpush.msra.mxu3 %v287_v58 }
  0x93   :  { %243 = vmatmul.f32.gmra.mxu0 %v204_v9  ;;  %357 = vmatpush.msra.mxu3 %v286_v59  ;;  %v389_v9 = vld [vmem:[#allocation2 + $0x1f8] sm:$0xff] }
  0x94   :  { %505 = vmatpush.msrb.mxu1 %v389_v9  ;;  %v536_v9 = vld [vmem:[#allocation2 + $0x2a8] sm:$0xff] }
  0x95   :  { %358 = vmatpush.msra.mxu3 %v285_v60 }
  0x96   :  { %v264_v10 = vpop.f32.mrf.mxu1 }
  0x97   :  { %359 = vmatpush.msra.mxu3 %v284_v62 }
  0x99   :  { %360 = vmatpush.msra.mxu3 %v283_v63 }
  0x9b   :  { %361 = vmatpush.msra.mxu3 %v282_v1 }
  0x9e   :  { %v267_v12 = vpop.f32.mrf.mxu1 }
  0xa6   :  { %v270_v14 = vpop.f32.mrf.mxu1 }
  0xae   :  { %v273_v23 = vpop.f32.mrf.mxu1 }
  0xf8   :  { %v235_v11 = vpop.f32.mrf.mxu0 }
  0xf9   :  { %v236_v17 = vadd.f32 %v1175_v15, %v235_v11  ;;  %v387_v11 = vld [vmem:[#allocation2 + $0x1e8] sm:$0xff] }
  0xfb   :  { %v265_v20 = vadd.f32 %v264_v10, %v236_v17  ;;  %v388_v10 = vld [vmem:[#allocation2 + $0x1f0] sm:$0xff]  ;;  %v381_v17 = vld [vmem:[#allocation2 + $0x1b8] sm:$0xff] }
  0xfc   :  { %506 = vmatpush.msrb.mxu1 %v388_v10  ;;  %v535_v10 = vld [vmem:[#allocation2 + $0x2a0] sm:$0xff] }
  0xfd   :  { %v276_v26 = vmax.f32 %v265_v20, 0.0  ;;  %v379_v20 = vld [vmem:[#allocation2 + $0x1a8] sm:$0xff] }
  0xfe   :  { %507 = vmatpush.msrb.mxu1 %v387_v11  ;;  %v534_v11 = vld [vmem:[#allocation2 + $0x298] sm:$0xff] }
  0xff   :  { %v298_v32 = vrot.slane %v276_v26, 1  ;;  %573 = vmatpush.msrb.mxu0 %v534_v11  ;;  %v675_v11 = vld [vmem:[#allocation2 + $0x3a8] sm:$0xff] }
 0x100   :  { %v238_v13 = vpop.f32.mrf.mxu0 }
 0x101   :  { %v239_v19 = vadd.f32 %v1175_v15, %v238_v13  ;;  %v385_v13 = vld [vmem:[#allocation2 + $0x1d8] sm:$0xff] }
 0x103   :  { %v268_v24 = vadd.f32 %v267_v12, %v239_v19  ;;  %v386_v12 = vld [vmem:[#allocation2 + $0x1e0] sm:$0xff]  ;;  %v402_v19 = vand.u32 7, %v1291_v28  ;;  %v938_v28 = vld [vmem:[#allocation2 + $0x690] sm:$0xff] }
 0x104   :  { %508 = vmatpush.msrb.mxu1 %v386_v12  ;;  %v533_v12 = vld [vmem:[#allocation2 + $0x290] sm:$0xff] }
 0x105   :  { %v277_v30 = vmax.f32 %v268_v24, 0.0  ;;  %v377_v24 = vld [vmem:[#allocation2 + $0x198] sm:$0xff]  ;;  %v422_v54 = vadd.s32 4294967295, %v402_v19  ;;  %574 = vmatpush.msrb.mxu0 %v533_v12  ;;  %v707_v12 = vld [vmem:[#allocation2 + $0x4a8] sm:$0xff] }
 0x106   :  { %509 = vmatpush.msrb.mxu1 %v385_v13  ;;  %v1176_v13 = vld [vmem:[#allocation2 + $0x218] ss:$0 sm:$0xff] }
 0x107   :  { %v299_v35 = vrot.slane %v277_v30, 1  ;;  %vm424_vm10 = vcmp.ge.s32.totalorder %v422_v54, 0 }
 0x108   :  { %v241_v16 = vpop.f32.mrf.mxu0  ;;  %v1372_v58 = vsel %vm424_vm10, 1.0, %v1239_v44  ;;  %722 = vmatpush.msra.mxu1 %v675_v11 }
 0x109   :  { %v242_v18 = vadd.f32 %v1175_v15, %v241_v16  ;;  %v304_v42 = vsel %vm151_vm1, %v298_v32, %v299_v35  ;;  %v382_v16 = vld [vmem:[#allocation2 + $0x1c0] sm:$0xff] }
 0x10a   :  { %v306_v45 = vmax.f32 %v276_v26, %v304_v42  ;;  %v409_v26 = vand.u32 7, %v1302_v36 }
 0x10b   :  { %v271_v21 = vadd.f32 %v270_v14, %v242_v18  ;;  %v384_v14 = vld [vmem:[#allocation2 + $0x1d0] sm:$0xff] }
 0x10c   :  { %v380_v18 = vld [vmem:[#allocation2 + $0x1b0] sm:$0xff]  ;;  %v423_v59 = vadd.s32 4294967295, %v409_v26 }
 0x10d   :  { %v278_v27 = vmax.f32 %v271_v21, 0.0 }
 0x10e   :  { %vm425_vm11 = vcmp.ge.s32.totalorder %v423_v59, 0 }
 0x10f   :  { %v300_v33 = vrot.slane %v278_v27, 1 }
 0x110   :  { %v244_v22 = vpop.f32.mrf.mxu0 }
 0x111   :  { %v245_v25 = vadd.f32 %v1175_v15, %v244_v22  ;;  %v303_v40 = vsel %vm151_vm1, %v299_v35, %v300_v33  ;;  %v383_v15 = vld [vmem:[#allocation2 + $0x1c8] sm:$0xff]  ;;  %v378_v22 = vld [vmem:[#allocation2 + $0x1a0] sm:$0xff]  ;;  %v373_v35 = vld [vmem:[#allocation2 + $0x178] sm:$0xff] }
 0x112   :  { %v307_v43 = vmax.f32 %v277_v30, %v303_v40  ;;  %v374_v30 = vld [vmem:[#allocation2 + $0x180] sm:$0xff] }
 0x113   :  { %v274_v29 = vadd.f32 %v273_v23, %v245_v25  ;;  %v440_v23 = vadd.s32 1, %v402_v19  ;;  %v376_v25 = vld [vmem:[#allocation2 + $0x190] sm:$0xff]  ;;  %v370_v40 = vld [vmem:[#allocation2 + $0x160] sm:$0xff]  ;;  %v530_v19 = vld [vmem:[#allocation2 + $0x278] sm:$0xff] }
 0x115   :  { %v279_v31 = vmax.f32 %v274_v29, 0.0  ;;  %vm444_vm8 = vcmp.lt.s32.totalorder %v440_v23, 8  ;;  %v528_v23 = vld [vmem:[#allocation2 + $0x268] sm:$0xff] }
 0x117   :  { %v301_v34 = vrot.slane %v279_v31, 1 }
 0x119   :  { %v305_v37 = vsel %vm151_vm1, %v301_v34, %v298_v32  ;;  %v302_v38 = vsel %vm151_vm1, %v300_v33, %v301_v34  ;;  %v1355_v33 = vsel %vm444_vm8, 1.0, %v1239_v44  ;;  %v441_v34 = vadd.s32 1, %v409_v26 }
 0x11a   :  { %v309_v39 = vmax.f32 %v279_v31, %v305_v37  ;;  %v308_v41 = vmax.f32 %v278_v27, %v302_v38  ;;  %v375_v27 = vld [vmem:[#allocation2 + $0x188] sm:$0xff]  ;;  %v372_v38 = vld [vmem:[#allocation2 + $0x170] sm:$0xff] }
 0x11b   :  { %vm445_vm9 = vcmp.lt.s32.totalorder %v441_v34, 8  ;;  %v524_v34 = vld [vmem:[#allocation2 + $0x248] sm:$0xff] }
 0x11c   :  { %329 = vmatpush.msra.mxu2 %v309_v39  ;;  %v371_v39 = vld [vmem:[#allocation2 + $0x168] sm:$0xff]  ;;  %v1364_v42 = vsel %vm445_vm9, 1.0, %v1239_v44 }
 0x11e   :  { %330 = vmatpush.msra.mxu2 %v308_v41 }
 0x120   :  { %331 = vmatpush.msra.mxu2 %v307_v43 }
 0x122   :  { %332 = vmatpush.msra.mxu2 %v306_v45  ;;  %v369_v45 = vld [vmem:[#allocation2 + $0x158] sm:$0xff] }
 0x123   :  { %1151 = vmatmul.msk.f32.vlgmr.msra.gmra.mxu2 %vm310_vm7, %v280_v46  ;;  %v626_v46 = vld [vmem:[#allocation2 + $0x320] sm:$0xff] }
 0x124   :  { %471 = vmatpush.msrb.mxu2 %v384_v14  ;;  %v532_v14 = vld [vmem:[#allocation2 + $0x288] sm:$0xff] }
 0x125   :  { %575 = vmatpush.msrb.mxu0 %v532_v14  ;;  %v706_v14 = vld [vmem:[#allocation2 + $0x4a0] sm:$0xff] }
 0x126   :  { %472 = vmatpush.msrb.mxu2 %v383_v15 }
 0x128   :  { %473 = vmatpush.msrb.mxu2 %v382_v16 }
 0x12a   :  { %474 = vmatpush.msrb.mxu2 %v381_v17  ;;  %v531_v17 = vld [vmem:[#allocation2 + $0x280] sm:$0xff] }
 0x12b   :  { %1152 = vmatmul.msk.f32.gmra.mxu2 %vm310_vm7, %v281_v47  ;;  %v625_v47 = vld [vmem:[#allocation2 + $0x318] sm:$0xff]  ;;  %576 = vmatpush.msrb.mxu0 %v531_v17  ;;  %v672_v17 = vld [vmem:[#allocation2 + $0x390] sm:$0xff] }
 0x12c   :  { %475 = vmatpush.msrb.mxu2 %v380_v18 }
 0x12d   :  { %577 = vmatpush.msrb.mxu0 %v530_v19  ;;  %v671_v19 = vld [vmem:[#allocation2 + $0x388] sm:$0xff] }
 0x12e   :  { %476 = vmatpush.msrb.mxu2 %v379_v20 }
 0x130   :  { %477 = vmatpush.msrb.mxu2 %v378_v22 }
 0x132   :  { %478 = vmatpush.msrb.mxu2 %v377_v24 }
 0x134   :  { %479 = vmatpush.msrb.mxu2 %v376_v25  ;;  %v527_v25 = vld [vmem:[#allocation2 + $0x260] sm:$0xff] }
 0x136   :  { %480 = vmatpush.msrb.mxu2 %v375_v27 }
 0x138   :  { %481 = vmatpush.msrb.mxu2 %v374_v30 }
 0x13a   :  { %482 = vmatpush.msrb.mxu2 %v373_v35 }
 0x13c   :  { %483 = vmatpush.msrb.mxu2 %v372_v38 }
 0x13e   :  { %484 = vmatpush.msrb.mxu2 %v371_v39  ;;  %v523_v39 = vld [vmem:[#allocation2 + $0x240] sm:$0xff] }
 0x140   :  { %485 = vmatpush.msrb.mxu2 %v370_v40 }
 0x142   :  { %486 = vmatpush.msrb.mxu2 %v369_v45  ;;  %v522_v45 = vld [vmem:[#allocation2 + $0x238] sm:$0xff] }
 0x144   :  { %641 = vmatpush.msra.mxu2 %v626_v46 }
 0x146   :  { %642 = vmatpush.msra.mxu2 %v625_v47  ;;  %v521_v47 = vld [vmem:[#allocation2 + $0x230] sm:$0xff] }
 0x148   :  { %643 = vmatpush.msra.mxu2 %v624_v48  ;;  %v520_v48 = vld [vmem:[#allocation2 + $0x228] sm:$0xff] }
 0x14a   :  { %644 = vmatpush.msra.mxu2 %v623_v49 }
 0x14c   :  { %645 = vmatpush.msra.mxu2 %v622_v50 }
 0x14e   :  { %646 = vmatpush.msra.mxu2 %v621_v51  ;;  %v519_v51 = vld [vmem:[#allocation2 + $0x220] sm:$0xff] }
 0x150   :  { %647 = vmatpush.msra.mxu2 %v620_v52 }
 0x152   :  { %648 = vmatpush.msra.mxu2 %v619_v53 }
 0x1a6   :  { %v334_v61 = vpop.f32.mrf.mxu2 }
 0x1a7   :  { %340 = vrot.lane.b32.xlu2 %v334_v61, %s1240_s0 }
 0x1ae   :  { %v337_v0 = vpop.f32.mrf.mxu2 }
 0x1af   :  { %342 = vrot.lane.b32.xlu2 %v337_v0, %s1240_s0 }
 0x201   :  { %v341_v3 = vpop.permute.xlu2 %340 }
 0x202   :  { %v344_v4 = vmax.f32 %v334_v61, %v341_v3 }
 0x204   :  { %362 = vmatmul.f32.vlgmr.msra.gmra.mxu3 %v344_v4  ;;  %v542_v4 = vld [vmem:[#allocation2 + $0x2d8] sm:$0xff] }
 0x205   :  { %604 = vmatpush.msrb.mxu3 %v542_v4  ;;  %v683_v4 = vld [vmem:[#allocation2 + $0x3e8] sm:$0xff] }
 0x209   :  { %v343_v5 = vpop.permute.xlu2 %342 }
 0x20a   :  { %v345_v6 = vmax.f32 %v337_v0, %v343_v5  ;;  %v1379_v0 = vsel %vm425_vm11, 1.0, %v1239_v44  ;;  %v541_v5 = vld [vmem:[#allocation2 + $0x2d0] sm:$0xff]  ;;  %v538_v44 = vld [vmem:[#allocation2 + $0x2b8] sm:$0xff] }
 0x20b   :  { %605 = vmatpush.msrb.mxu3 %v541_v5  ;;  %v682_v5 = vld [vmem:[#allocation2 + $0x3e0] sm:$0xff] }
 0x20c   :  { %365 = vmatmul.f32.gmra.mxu3 %v345_v6  ;;  %v540_v6 = vld [vmem:[#allocation2 + $0x2c8] sm:$0xff] }
 0x20d   :  { %606 = vmatpush.msrb.mxu3 %v540_v6  ;;  %v681_v6 = vld [vmem:[#allocation2 + $0x3d8] sm:$0xff] }
 0x20f   :  { %607 = vmatpush.msrb.mxu3 %v539_v7  ;;  %v680_v7 = vld [vmem:[#allocation2 + $0x3d0] sm:$0xff] }
 0x211   :  { %608 = vmatpush.msrb.mxu3 %v538_v44  ;;  %v679_v44 = vld [vmem:[#allocation2 + $0x3c8] sm:$0xff] }
 0x213   :  { %609 = vmatpush.msrb.mxu3 %v537_v8  ;;  %v678_v8 = vld [vmem:[#allocation2 + $0x3c0] sm:$0xff] }
 0x215   :  { %610 = vmatpush.msrb.mxu3 %v536_v9  ;;  %v677_v9 = vld [vmem:[#allocation2 + $0x3b8] sm:$0xff] }
 0x217   :  { %611 = vmatpush.msrb.mxu3 %v535_v10  ;;  %v676_v10 = vld [vmem:[#allocation2 + $0x3b0] sm:$0xff] }
 0x287   :  { %v1347_v21 = vpop.f32.mrf.mxu3 }
 0x288   :  { %456 = vrot.lane.b32.xlu0 %v1347_v21, %s1238_s1  ;;  %v436_v31 = vrot.slane %v1347_v21, 1  ;;  %v394_v56 = vrot.slane %v1347_v21, 7 }
 0x28f   :  { %v366_v29 = vpop.f32.mrf.mxu3 }
 0x290   :  { %v437_v32 = vrot.slane %v366_v29, 1  ;;  %458 = vrot.lane.b32.xlu1 %v366_v29, %s1238_s1  ;;  %v395_v55 = vrot.slane %v366_v29, 7 }
 0x292   :  { %v438_v37 = vsel %vm151_vm1, %v436_v31, %v437_v32  ;;  %v439_v41 = vsel %vm151_vm1, %v437_v32, %v436_v31  ;;  %v397_v57 = vsel %vm63_vm0, %v395_v55, %v394_v56  ;;  %v396_v63 = vsel %vm63_vm0, %v394_v56, %v395_v55  ;;  %v525_v31 = vld [vmem:[#allocation2 + $0x250] sm:$0xff]  ;;  %v691_v55 = vld [vmem:[#allocation2 + $0x428] sm:$0xff]  ;;  %v690_v56 = vld [vmem:[#allocation2 + $0x420] sm:$0xff] }
 0x293   :  { %v452_v36 = vmul.f32 %v1355_v33, %v438_v37  ;;  %v453_v43 = vmul.f32 %v1364_v42, %v439_v41  ;;  %v434_v60 = vmul.f32 %v1372_v58, %v397_v57  ;;  %v435_v1 = vmul.f32 %v1379_v0, %v396_v63  ;;  %745 = vmatpush.msra.mxu3 %v691_v55  ;;  %v687_v63 = vld [vmem:[#allocation2 + $0x408] sm:$0xff]  ;;  %v660_v55 = vld [vmem:[#allocation2 + $0x330] sm:$0xff] }
 0x295   :  { %1157 = vmatmul.msk.f32.vlgmr.msrb.gmra.mxu1 %vm200_vm2, %v452_v36  ;;  %746 = vmatpush.msra.mxu3 %v690_v56  ;;  %v692_v56 = vld [vmem:[#allocation2 + $0x430] sm:$0xff] }
 0x29d   :  { %1158 = vmatmul.msk.f32.gmra.mxu1 %vm200_vm2, %v453_v43 }
 0x2fa   :  { %v457_v61 = vpop.permute.xlu0 %456 }
 0x2fb   :  { %v462_v62 = vsel %vm200_vm2, %v434_v60, %v457_v61  ;;  %v689_v60 = vld [vmem:[#allocation2 + $0x418] sm:$0xff] }
 0x2fc   :  { %487 = vmatmul.f32.vlgmr.msrb.gmra.mxu2 %v462_v62  ;;  %v688_v62 = vld [vmem:[#allocation2 + $0x410] sm:$0xff]  ;;  %747 = vmatpush.msra.mxu3 %v689_v60 }
 0x2fd   :  { %768 = vmatpush.msrb.mxu2 %v707_v12 }
 0x2fe   :  { %748 = vmatpush.msra.mxu3 %v688_v62 }
 0x2ff   :  { %769 = vmatpush.msrb.mxu2 %v706_v14  ;;  %v824_v14 = vld [vmem:[#allocation2 + $0x5b0] sm:$0xff] }
 0x300   :  { %749 = vmatpush.msra.mxu3 %v687_v63 }
 0x302   :  { %v459_v2 = vpop.permute.xlu1 %458 }
 0x303   :  { %v463_v3 = vsel %vm200_vm2, %v435_v1, %v459_v2  ;;  %v686_v1 = vld [vmem:[#allocation2 + $0x400] sm:$0xff]  ;;  %v685_v2 = vld [vmem:[#allocation2 + $0x3f8] sm:$0xff] }
 0x304   :  { %490 = vmatmul.f32.gmra.mxu2 %v463_v3  ;;  %750 = vmatpush.msra.mxu3 %v686_v1  ;;  %v684_v3 = vld [vmem:[#allocation2 + $0x3f0] sm:$0xff] }
 0x306   :  { %751 = vmatpush.msra.mxu3 %v685_v2 }
 0x308   :  { %752 = vmatpush.msra.mxu3 %v684_v3 }
 0x30a   :  { %753 = vmatpush.msra.mxu3 %v683_v4 }
 0x30c   :  { %1161 = vmatmul.msk.f32.vlgmr.msra.gmra.mxu2 %vm200_vm2, %v1347_v21  ;;  %v529_v21 = vld [vmem:[#allocation2 + $0x270] sm:$0xff]  ;;  %754 = vmatpush.msra.mxu3 %v682_v5 }
 0x30d   :  { %578 = vmatpush.msrb.mxu0 %v529_v21  ;;  %v670_v21 = vld [vmem:[#allocation2 + $0x380] sm:$0xff] }
 0x30e   :  { %755 = vmatpush.msra.mxu3 %v681_v6 }
 0x30f   :  { %579 = vmatpush.msrb.mxu0 %v528_v23  ;;  %v669_v23 = vld [vmem:[#allocation2 + $0x378] sm:$0xff] }
 0x310   :  { %756 = vmatpush.msra.mxu3 %v680_v7 }
 0x311   :  { %580 = vmatpush.msrb.mxu0 %v527_v25  ;;  %v668_v25 = vld [vmem:[#allocation2 + $0x370] sm:$0xff] }
 0x312   :  { %v511_v15 = vpop.f32.mrf.mxu1  ;;  %757 = vmatpush.msra.mxu3 %v679_v44 }
 0x314   :  { %1162 = vmatmul.msk.f32.gmra.mxu2 %vm200_vm2, %v366_v29  ;;  %v526_v29 = vld [vmem:[#allocation2 + $0x258] sm:$0xff]  ;;  %758 = vmatpush.msra.mxu3 %v678_v8 }
 0x315   :  { %581 = vmatpush.msrb.mxu0 %v526_v29  ;;  %v699_v29 = vld [vmem:[#allocation2 + $0x468] sm:$0xff] }
 0x316   :  { %759 = vmatpush.msra.mxu3 %v677_v9 }
 0x317   :  { %582 = vmatpush.msrb.mxu0 %v525_v31  ;;  %v1177_v31 = vld [vmem:[#allocation2 + $0x328] ss:$0 sm:$0xff] }
 0x318   :  { %760 = vmatpush.msra.mxu3 %v676_v10 }
 0x319   :  { %583 = vmatpush.msrb.mxu0 %v524_v34 }
 0x31a   :  { %v514_v27 = vpop.f32.mrf.mxu1 }
 0x31b   :  { %584 = vmatpush.msrb.mxu0 %v523_v39 }
 0x31d   :  { %585 = vmatpush.msrb.mxu0 %v522_v45 }
 0x31f   :  { %586 = vmatpush.msrb.mxu0 %v521_v47  ;;  %v696_v47 = vld [vmem:[#allocation2 + $0x450] sm:$0xff] }
 0x321   :  { %587 = vmatpush.msrb.mxu0 %v520_v48 }
 0x323   :  { %588 = vmatpush.msrb.mxu0 %v519_v51  ;;  %v662_v51 = vld [vmem:[#allocation2 + $0x340] sm:$0xff] }
 0x37f   :  { %v488_v16 = vpop.f32.mrf.mxu2 }
 0x380   :  { %v489_v18 = vadd.f32 %v1176_v13, %v488_v16  ;;  %v705_v16 = vld [vmem:[#allocation2 + $0x498] sm:$0xff] }
 0x381   :  { %770 = vmatpush.msrb.mxu2 %v705_v16  ;;  %v822_v16 = vld [vmem:[#allocation2 + $0x5a0] sm:$0xff] }
 0x382   :  { %v512_v20 = vadd.f32 %v511_v15, %v489_v18  ;;  %v673_v15 = vld [vmem:[#allocation2 + $0x398] sm:$0xff]  ;;  %v704_v18 = vld [vmem:[#allocation2 + $0x490] sm:$0xff] }
 0x383   :  { %771 = vmatpush.msrb.mxu2 %v704_v18  ;;  %v840_v18 = vld [vmem:[#allocation2 + $0x630] sm:$0xff] }
 0x384   :  { %v517_v22 = vmax.f32 %v512_v20, 0.0  ;;  %v703_v20 = vld [vmem:[#allocation2 + $0x488] sm:$0xff] }
 0x385   :  { %772 = vmatpush.msrb.mxu2 %v703_v20  ;;  %v839_v20 = vld [vmem:[#allocation2 + $0x628] sm:$0xff] }
 0x386   :  { %558 = vrot.lane.b32.xlu2 %v517_v22, %s1238_s1  ;;  %v544_v35 = vrot.slane %v517_v22, 7  ;;  %v550_v37 = vrot.slane %v517_v22, 1  ;;  %v702_v22 = vld [vmem:[#allocation2 + $0x480] sm:$0xff] }
 0x387   :  { %v491_v24 = vpop.f32.mrf.mxu2  ;;  %773 = vmatpush.msrb.mxu2 %v702_v22  ;;  %v806_v22 = vld [vmem:[#allocation2 + $0x520] sm:$0xff] }
 0x388   :  { %v492_v26 = vadd.f32 %v1176_v13, %v491_v24  ;;  %v674_v13 = vld [vmem:[#allocation2 + $0x3a0] sm:$0xff]  ;;  %v701_v24 = vld [vmem:[#allocation2 + $0x478] sm:$0xff] }
 0x389   :  { %723 = vmatpush.msra.mxu1 %v674_v13  ;;  %774 = vmatpush.msrb.mxu2 %v701_v24  ;;  %v820_v24 = vld [vmem:[#allocation2 + $0x590] sm:$0xff] }
 0x38a   :  { %v515_v30 = vadd.f32 %v514_v27, %v492_v26  ;;  %v700_v26 = vld [vmem:[#allocation2 + $0x470] sm:$0xff]  ;;  %v667_v27 = vld [vmem:[#allocation2 + $0x368] sm:$0xff] }
 0x38b   :  { %724 = vmatpush.msra.mxu1 %v673_v15  ;;  %775 = vmatpush.msrb.mxu2 %v700_v26  ;;  %v823_v15 = vld [vmem:[#allocation2 + $0x5a8] sm:$0xff]  ;;  %v837_v26 = vld [vmem:[#allocation2 + $0x618] sm:$0xff] }
 0x38c   :  { %v518_v32 = vmax.f32 %v515_v30, 0.0  ;;  %v1178_v30 = vld [vmem:[#allocation2 + $0x2e0] ss:$0 sm:$0xff] }
 0x38d   :  { %725 = vmatpush.msra.mxu1 %v672_v17  ;;  %776 = vmatpush.msrb.mxu2 %v699_v29  ;;  %v808_v17 = vld [vmem:[#allocation2 + $0x530] sm:$0xff]  ;;  %v818_v29 = vld [vmem:[#allocation2 + $0x580] sm:$0xff] }
 0x38e   :  { %v545_v36 = vrot.slane %v518_v32, 7  ;;  %v551_v38 = vrot.slane %v518_v32, 1  ;;  %560 = vrot.lane.b32.xlu0 %v518_v32, %s1238_s1  ;;  %855 = vmatpush.msra.mxu0 %v808_v17 }
 0x38f   :  { %726 = vmatpush.msra.mxu1 %v671_v19  ;;  %v650_v32 = vpop.f32.mrf.mxu2  ;;  %v807_v19 = vld [vmem:[#allocation2 + $0x528] sm:$0xff] }
 0x390   :  { %v552_v40 = vsel %vm151_vm1, %v550_v37, %v551_v38  ;;  %v547_v41 = vsel %vm63_vm0, %v545_v36, %v544_v35  ;;  %v546_v46 = vsel %vm63_vm0, %v544_v35, %v545_v36  ;;  %v553_v49 = vsel %vm151_vm1, %v551_v38, %v550_v37  ;;  %v666_v37 = vld [vmem:[#allocation2 + $0x360] sm:$0xff]  ;;  %856 = vmatpush.msra.mxu0 %v807_v19 }
 0x391   :  { %v554_v43 = vmul.f32 %v1355_v33, %v552_v40  ;;  %v555_v50 = vmul.f32 %v1364_v42, %v553_v49  ;;  %v548_v52 = vmul.f32 %v1372_v58, %v547_v41  ;;  %v549_v57 = vmul.f32 %v1379_v0, %v546_v46  ;;  %727 = vmatpush.msra.mxu1 %v670_v21  ;;  %v698_v36 = vld [vmem:[#allocation2 + $0x460] sm:$0xff]  ;;  %v665_v41 = vld [vmem:[#allocation2 + $0x358] sm:$0xff]  ;;  %v664_v46 = vld [vmem:[#allocation2 + $0x350] sm:$0xff] }
 0x392   :  { %777 = vmatpush.msrb.mxu2 %v698_v36  ;;  %v651_v39 = vadd.f32 %v1177_v31, %v650_v32  ;;  %v663_v49 = vld [vmem:[#allocation2 + $0x348] sm:$0xff]  ;;  %v821_v21 = vld [vmem:[#allocation2 + $0x598] sm:$0xff]  ;;  %857 = vmatpush.msra.mxu0 %v806_v22 }
 0x393   :  { %1159 = vmatmul.msk.f32.vlgmr.msrb.gmra.mxu3 %vm200_vm2, %v554_v43  ;;  %728 = vmatpush.msra.mxu1 %v669_v23  ;;  %v697_v43 = vld [vmem:[#allocation2 + $0x458] sm:$0xff]  ;;  %v838_v23 = vld [vmem:[#allocation2 + $0x620] sm:$0xff]  ;;  %v815_v32 = vld [vmem:[#allocation2 + $0x568] sm:$0xff] }
 0x394   :  { %778 = vmatpush.msrb.mxu2 %v697_v43  ;;  %901 = vmatpush.msrb.mxu3 %v840_v18  ;;  %v813_v36 = vld [vmem:[#allocation2 + $0x558] sm:$0xff]  ;;  %v834_v43 = vld [vmem:[#allocation2 + $0x600] sm:$0xff] }
 0x395   :  { %729 = vmatpush.msra.mxu1 %v668_v25  ;;  %v805_v25 = vld [vmem:[#allocation2 + $0x518] sm:$0xff] }
 0x396   :  { %779 = vmatpush.msrb.mxu2 %v696_v47  ;;  %902 = vmatpush.msrb.mxu3 %v839_v20  ;;  %v833_v47 = vld [vmem:[#allocation2 + $0x5f8] sm:$0xff] }
 0x397   :  { %730 = vmatpush.msra.mxu1 %v667_v27  ;;  %v819_v27 = vld [vmem:[#allocation2 + $0x588] sm:$0xff]  ;;  %858 = vmatpush.msra.mxu0 %v805_v25 }
 0x398   :  { %903 = vmatpush.msrb.mxu3 %v838_v23 }
 0x399   :  { %731 = vmatpush.msra.mxu1 %v666_v37  ;;  %v836_v37 = vld [vmem:[#allocation2 + $0x610] sm:$0xff] }
 0x39a   :  { %904 = vmatpush.msrb.mxu3 %v837_v26 }
 0x39b   :  { %1160 = vmatmul.msk.f32.gmra.mxu3 %vm200_vm2, %v555_v50  ;;  %732 = vmatpush.msra.mxu1 %v665_v41  ;;  %v695_v50 = vld [vmem:[#allocation2 + $0x448] sm:$0xff]  ;;  %v802_v41 = vld [vmem:[#allocation2 + $0x500] sm:$0xff] }
 0x39c   :  { %780 = vmatpush.msrb.mxu2 %v695_v50  ;;  %905 = vmatpush.msrb.mxu3 %v836_v37  ;;  %v800_v50 = vld [vmem:[#allocation2 + $0x4f0] sm:$0xff] }
 0x39d   :  { %733 = vmatpush.msra.mxu1 %v664_v46  ;;  %v801_v46 = vld [vmem:[#allocation2 + $0x4f8] sm:$0xff] }
 0x39f   :  { %734 = vmatpush.msra.mxu1 %v663_v49  ;;  %v810_v49 = vld [vmem:[#allocation2 + $0x540] sm:$0xff] }
 0x3a1   :  { %735 = vmatpush.msra.mxu1 %v662_v51  ;;  %v832_v51 = vld [vmem:[#allocation2 + $0x5f0] sm:$0xff] }
 0x3e0   :  { %v559_v53 = vpop.permute.xlu2 %558 }
 0x3e1   :  { %v564_v54 = vsel %vm200_vm2, %v548_v52, %v559_v53  ;;  %v694_v52 = vld [vmem:[#allocation2 + $0x440] sm:$0xff]  ;;  %v661_v53 = vld [vmem:[#allocation2 + $0x338] sm:$0xff] }
 0x3e2   :  { %589 = vmatmul.f32.vlgmr.msrb.gmra.mxu0 %v564_v54  ;;  %v693_v54 = vld [vmem:[#allocation2 + $0x438] sm:$0xff]  ;;  %781 = vmatpush.msrb.mxu2 %v694_v52 }
 0x3e3   :  { %736 = vmatpush.msra.mxu1 %v661_v53  ;;  %v809_v52 = vld [vmem:[#allocation2 + $0x538] sm:$0xff]  ;;  %v799_v53 = vld [vmem:[#allocation2 + $0x4e8] sm:$0xff] }
 0x3e4   :  { %782 = vmatpush.msrb.mxu2 %v693_v54  ;;  %v831_v54 = vld [vmem:[#allocation2 + $0x5e8] sm:$0xff] }
 0x3e5   :  { %737 = vmatpush.msra.mxu1 %v660_v55  ;;  %v798_v55 = vld [vmem:[#allocation2 + $0x4e0] sm:$0xff] }
 0x3e6   :  { %783 = vmatpush.msrb.mxu2 %v692_v56  ;;  %v830_v56 = vld [vmem:[#allocation2 + $0x5e0] sm:$0xff] }
 0x3e7   :  { %878 = vmatpush.msrb.mxu1 %v824_v14 }
 0x3e9   :  { %879 = vmatpush.msrb.mxu1 %v823_v15 }
 0x3eb   :  { %880 = vmatpush.msrb.mxu1 %v822_v16 }
 0x3ed   :  { %881 = vmatpush.msrb.mxu1 %v821_v21 }
 0x3ef   :  { %882 = vmatpush.msrb.mxu1 %v820_v24 }
 0x3f1   :  { %883 = vmatpush.msrb.mxu1 %v819_v27 }
 0x3f3   :  { %884 = vmatpush.msrb.mxu1 %v818_v29 }
 0x400   :  { %v561_v59 = vpop.permute.xlu0 %560 }
 0x401   :  { %v565_v61 = vsel %vm200_vm2, %v549_v57, %v561_v59  ;;  %v653_v57 = vpop.f32.mrf.mxu2 }
 0x402   :  { %592 = vmatmul.f32.gmra.mxu0 %v565_v61  ;;  %v654_v62 = vadd.f32 %v1177_v31, %v653_v57  ;;  %v816_v31 = vld [vmem:[#allocation2 + $0x570] sm:$0xff]  ;;  %v797_v57 = vld [vmem:[#allocation2 + $0x4d8] sm:$0xff] }
 0x416   :  { %v613_v38 = vpop.f32.mrf.mxu3 }
 0x41e   :  { %v616_v61 = vpop.f32.mrf.mxu3 }
 0x45f   :  { %v590_v34 = vpop.f32.mrf.mxu0 }
 0x460   :  { %v591_v35 = vadd.f32 %v1178_v30, %v590_v34  ;;  %v814_v34 = vld [vmem:[#allocation2 + $0x560] sm:$0xff] }
 0x462   :  { %v614_v40 = vadd.f32 %v613_v38, %v591_v35  ;;  %v804_v35 = vld [vmem:[#allocation2 + $0x510] sm:$0xff]  ;;  %v803_v38 = vld [vmem:[#allocation2 + $0x508] sm:$0xff] }
 0x463   :  { %859 = vmatpush.msra.mxu0 %v804_v35 }
 0x464   :  { %v656_v45 = vadd.f32 %v651_v39, %v614_v40  ;;  %v835_v39 = vld [vmem:[#allocation2 + $0x608] sm:$0xff]  ;;  %v812_v40 = vld [vmem:[#allocation2 + $0x550] sm:$0xff] }
 0x465   :  { %860 = vmatpush.msra.mxu0 %v803_v38  ;;  %906 = vmatpush.msrb.mxu3 %v835_v39 }
 0x466   :  { %v1404_v48 = vmax.f32 %v656_v45, 0.0  ;;  %v811_v45 = vld [vmem:[#allocation2 + $0x548] sm:$0xff] }
 0x467   :  { %861 = vmatpush.msra.mxu0 %v802_v41  ;;  %907 = vmatpush.msrb.mxu3 %v834_v43 }
 0x468   :  { %761 = vmatmul.f32.vlgmr.msra.gmra.mxu3 %v1404_v48  ;;  %v709_v3 = vrot.slane %v1404_v48, 7  ;;  %v715_v5 = vrot.slane %v1404_v48, 1 }
 0x469   :  { %862 = vmatpush.msra.mxu0 %v801_v46  ;;  %908 = vmatpush.msrb.mxu3 %v833_v47 }
 0x46b   :  { %863 = vmatpush.msra.mxu0 %v800_v50  ;;  %909 = vmatpush.msrb.mxu3 %v832_v51 }
 0x46d   :  { %864 = vmatpush.msra.mxu0 %v799_v53  ;;  %910 = vmatpush.msrb.mxu3 %v831_v54 }
 0x46f   :  { %865 = vmatpush.msra.mxu0 %v798_v55  ;;  %911 = vmatpush.msrb.mxu3 %v830_v56  ;;  %v928_v56 = vld [vmem:[#allocation2 + $0x640] sm:$0xff] }
 0x471   :  { %866 = vmatpush.msra.mxu0 %v797_v57  ;;  %v943_v57 = vld [vmem:[#allocation2 + $0x6b8] sm:$0xff] }
 0x47f   :  { %v593_v59 = vpop.f32.mrf.mxu0 }
 0x480   :  { %v594_v60 = vadd.f32 %v1178_v30, %v593_v59  ;;  %v817_v30 = vld [vmem:[#allocation2 + $0x578] sm:$0xff] }
 0x481   :  { %885 = vmatpush.msrb.mxu1 %v817_v30  ;;  %v829_v59 = vld [vmem:[#allocation2 + $0x5d8] sm:$0xff] }
 0x482   :  { %v617_v63 = vadd.f32 %v616_v61, %v594_v60  ;;  %912 = vmatpush.msrb.mxu3 %v829_v59  ;;  %v796_v60 = vld [vmem:[#allocation2 + $0x4d0] sm:$0xff]  ;;  %v941_v59 = vld [vmem:[#allocation2 + $0x6a8] sm:$0xff] }
 0x483   :  { %886 = vmatpush.msrb.mxu1 %v816_v31  ;;  %v828_v61 = vld [vmem:[#allocation2 + $0x5d0] sm:$0xff]  ;;  %867 = vmatpush.msra.mxu0 %v796_v60  ;;  %v940_v60 = vld [vmem:[#allocation2 + $0x6a0] sm:$0xff] }
 0x484   :  { %v657_v1 = vadd.f32 %v654_v62, %v617_v63  ;;  %913 = vmatpush.msrb.mxu3 %v828_v61  ;;  %v795_v62 = vld [vmem:[#allocation2 + $0x4c8] sm:$0xff]  ;;  %v939_v61 = vld [vmem:[#allocation2 + $0x698] sm:$0xff] }
 0x485   :  { %887 = vmatpush.msrb.mxu1 %v815_v32  ;;  %v827_v63 = vld [vmem:[#allocation2 + $0x5c8] sm:$0xff]  ;;  %868 = vmatpush.msra.mxu0 %v795_v62 }
 0x486   :  { %v1407_v2 = vmax.f32 %v657_v1, 0.0  ;;  %v794_v1 = vld [vmem:[#allocation2 + $0x4c0] sm:$0xff]  ;;  %914 = vmatpush.msrb.mxu3 %v827_v63  ;;  %v937_v62 = vld [vmem:[#allocation2 + $0x688] sm:$0xff] }
 0x487   :  { %888 = vmatpush.msrb.mxu1 %v814_v34  ;;  %869 = vmatpush.msra.mxu0 %v794_v1  ;;  %v1180_v34 = vld [vmem:[#allocation2 + $0x638] ss:$0 sm:$0xff]  ;;  %v936_v63 = vld [vmem:[#allocation2 + $0x680] sm:$0xff] }
 0x488   :  { %764 = vmatmul.f32.gmra.mxu3 %v1407_v2  ;;  %v710_v4 = vrot.slane %v1407_v2, 7  ;;  %v716_v6 = vrot.slane %v1407_v2, 1  ;;  %v935_v1 = vld [vmem:[#allocation2 + $0x678] sm:$0xff] }
 0x489   :  { %889 = vmatpush.msrb.mxu1 %v813_v36 }
 0x48a   :  { %v712_v7 = vsel %vm63_vm0, %v710_v4, %v709_v3  ;;  %v717_v44 = vsel %vm151_vm1, %v715_v5, %v716_v6  ;;  %v711_v10 = vsel %vm63_vm0, %v709_v3, %v710_v4  ;;  %v718_v11 = vsel %vm151_vm1, %v716_v6, %v715_v5  ;;  %v826_v3 = vld [vmem:[#allocation2 + $0x5c0] sm:$0xff]  ;;  %v793_v4 = vld [vmem:[#allocation2 + $0x4b8] sm:$0xff]  ;;  %v1179_v6 = vld [vmem:[#allocation2 + $0x4b0] ss:$0 sm:$0xff] }
 0x48b   :  { %v713_v8 = vmul.f32 %v1372_v58, %v712_v7  ;;  %v719_v9 = vmul.f32 %v1355_v33, %v717_v44  ;;  %v714_v12 = vmul.f32 %v1379_v0, %v711_v10  ;;  %v720_v13 = vmul.f32 %v1364_v42, %v718_v11  ;;  %890 = vmatpush.msrb.mxu1 %v812_v40  ;;  %v825_v5 = vld [vmem:[#allocation2 + $0x5b8] sm:$0xff] }
 0x48c   :  { %915 = vmatpush.msrb.mxu3 %v826_v3  ;;  %870 = vmatpush.msra.mxu0 %v793_v4  ;;  %v934_v3 = vld [vmem:[#allocation2 + $0x670] sm:$0xff]  ;;  %v933_v4 = vld [vmem:[#allocation2 + $0x668] sm:$0xff] }
 0x48d   :  { %738 = vmatmul.f32.vlgmr.msra.gmra.mxu1 %v713_v8  ;;  %784 = vmatmul.f32.vlgmr.msrb.gmra.mxu2 %v719_v9 }
 0x48e   :  { %891 = vmatpush.msrb.mxu1 %v811_v45  ;;  %916 = vmatpush.msrb.mxu3 %v825_v5  ;;  %v932_v5 = vld [vmem:[#allocation2 + $0x660] sm:$0xff] }
 0x490   :  { %892 = vmatpush.msrb.mxu1 %v810_v49 }
 0x492   :  { %893 = vmatpush.msrb.mxu1 %v809_v52 }
 0x495   :  { %741 = vmatmul.f32.gmra.mxu1 %v714_v12  ;;  %787 = vmatmul.f32.gmra.mxu2 %v720_v13 }
 0x4eb   :  { %v762_v8 = vpop.f32.mrf.mxu3 }
 0x50a   :  { %v739_v7 = vpop.f32.mrf.mxu1 }
 0x50b   :  { %v740_v44 = vadd.f32 %v1179_v6, %v739_v7  ;;  %v765_v15 = vpop.f32.mrf.mxu3  ;;  %v930_v7 = vld [vmem:[#allocation2 + $0x650] sm:$0xff] }
 0x50d   :  { %v763_v9 = vadd.f32 %v762_v8, %v740_v44  ;;  %v929_v8 = vld [vmem:[#allocation2 + $0x648] sm:$0xff] }
 0x510   :  { %v785_v10 = vpop.f32.mrf.mxu2 }
 0x511   :  { %v786_v11 = vadd.f32 %v785_v10, %v763_v9  ;;  %v1005_v9 = vld [vmem:[#allocation2 + $0x700] sm:$0xff]  ;;  %v1004_v10 = vld [vmem:[#allocation2 + $0x6f8] sm:$0xff] }
 0x512   :  { %v742_v12 = vpop.f32.mrf.mxu1 }
 0x513   :  { %v791_v13 = vmax.f32 %v786_v11, 0.0  ;;  %v743_v14 = vadd.f32 %v1179_v6, %v742_v12  ;;  %v931_v6 = vld [vmem:[#allocation2 + $0x658] sm:$0xff]  ;;  %v1003_v11 = vld [vmem:[#allocation2 + $0x6f0] sm:$0xff]  ;;  %v1002_v12 = vld [vmem:[#allocation2 + $0x6e8] sm:$0xff] }
 0x515   :  { %894 = vmatmul.f32.vlgmr.msrb.gmra.mxu1 %v791_v13  ;;  %v766_v16 = vadd.f32 %v765_v15, %v743_v14  ;;  %v842_v20 = vrot.slane %v791_v13, 7  ;;  %v848_v21 = vrot.slane %v791_v13, 1  ;;  %v1001_v13 = vld [vmem:[#allocation2 + $0x6e0] sm:$0xff]  ;;  %v1000_v14 = vld [vmem:[#allocation2 + $0x6d8] sm:$0xff]  ;;  %v999_v15 = vld [vmem:[#allocation2 + $0x6d0] sm:$0xff] }
 0x518   :  { %v788_v17 = vpop.f32.mrf.mxu2 }
 0x519   :  { %v789_v18 = vadd.f32 %v788_v17, %v766_v16 }
 0x51b   :  { %v792_v19 = vmax.f32 %v789_v18, 0.0  ;;  %v998_v18 = vld [vmem:[#allocation2 + $0x6c8] sm:$0xff] }
 0x51d   :  { %v843_v22 = vrot.slane %v792_v19, 7  ;;  %v849_v23 = vrot.slane %v792_v19, 1  ;;  %897 = vmatmul.f32.gmra.mxu1 %v792_v19  ;;  %v1022_v19 = vld [vmem:[#allocation2 + $0x788] sm:$0xff] }
 0x51e   :  { %1049 = vmatpush.msra.mxu1 %v1022_v19 }
 0x51f   :  { %v845_v24 = vsel %vm63_vm0, %v843_v22, %v842_v20  ;;  %v850_v25 = vsel %vm151_vm1, %v848_v21, %v849_v23  ;;  %v844_v29 = vsel %vm63_vm0, %v842_v20, %v843_v22  ;;  %v851_v30 = vsel %vm151_vm1, %v849_v23, %v848_v21  ;;  %v1021_v20 = vld [vmem:[#allocation2 + $0x780] sm:$0xff]  ;;  %v1020_v21 = vld [vmem:[#allocation2 + $0x778] sm:$0xff]  ;;  %v1019_v22 = vld [vmem:[#allocation2 + $0x770] sm:$0xff] }
 0x520   :  { %v846_v26 = vmul.f32 %v1372_v58, %v845_v24  ;;  %v852_v27 = vmul.f32 %v1355_v33, %v850_v25  ;;  %v847_v31 = vmul.f32 %v1379_v0, %v844_v29  ;;  %v853_v32 = vmul.f32 %v1364_v42, %v851_v30  ;;  %1050 = vmatpush.msra.mxu1 %v1021_v20  ;;  %v1018_v23 = vld [vmem:[#allocation2 + $0x768] sm:$0xff]  ;;  %v1017_v24 = vld [vmem:[#allocation2 + $0x760] sm:$0xff]  ;;  %v1016_v25 = vld [vmem:[#allocation2 + $0x758] sm:$0xff] }
 0x521   :  { %v1013_v29 = vld [vmem:[#allocation2 + $0x740] sm:$0xff]  ;;  %v1012_v30 = vld [vmem:[#allocation2 + $0x738] sm:$0xff] }
 0x522   :  { %871 = vmatmul.f32.vlgmr.msra.gmra.mxu0 %v846_v26  ;;  %917 = vmatmul.f32.vlgmr.msrb.gmra.mxu3 %v852_v27  ;;  %v1015_v26 = vld [vmem:[#allocation2 + $0x750] sm:$0xff]  ;;  %v1014_v27 = vld [vmem:[#allocation2 + $0x748] sm:$0xff] }
 0x523   :  { %1051 = vmatpush.msra.mxu1 %v1020_v21 }
 0x525   :  { %1052 = vmatpush.msra.mxu1 %v1019_v22 }
 0x527   :  { %1053 = vmatpush.msra.mxu1 %v1018_v23 }
 0x529   :  { %1054 = vmatpush.msra.mxu1 %v1017_v24 }
 0x52a   :  { %874 = vmatmul.f32.gmra.mxu0 %v847_v31  ;;  %920 = vmatmul.f32.gmra.mxu3 %v853_v32  ;;  %v1011_v31 = vld [vmem:[#allocation2 + $0x730] sm:$0xff]  ;;  %v1010_v32 = vld [vmem:[#allocation2 + $0x728] sm:$0xff] }
 0x52b   :  { %1055 = vmatpush.msra.mxu1 %v1016_v25 }
 0x52d   :  { %1056 = vmatpush.msra.mxu1 %v1015_v26 }
 0x52f   :  { %1057 = vmatpush.msra.mxu1 %v1014_v27 }
 0x531   :  { %1058 = vmatpush.msra.mxu1 %v1013_v29 }
 0x533   :  { %1059 = vmatpush.msra.mxu1 %v1012_v30 }
 0x535   :  { %1060 = vmatpush.msra.mxu1 %v1011_v31 }
 0x537   :  { %1061 = vmatpush.msra.mxu1 %v1010_v32 }
 0x592   :  { %v895_v37 = vpop.f32.mrf.mxu1 }
 0x59a   :  { %v898_v41 = vpop.f32.mrf.mxu1 }
 0x59f   :  { %v872_v35 = vpop.f32.mrf.mxu0 }
 0x5a0   :  { %v873_v58 = vadd.f32 %v1180_v34, %v872_v35 }
 0x5a2   :  { %v896_v33 = vadd.f32 %v895_v37, %v873_v58  ;;  %v1008_v37 = vld [vmem:[#allocation2 + $0x718] sm:$0xff]  ;;  %v1007_v58 = vld [vmem:[#allocation2 + $0x710] sm:$0xff] }
 0x5a5   :  { %v918_v36 = vpop.f32.mrf.mxu3 }
 0x5a6   :  { %v919_v39 = vadd.f32 %v918_v36, %v896_v33  ;;  %v1006_v36 = vld [vmem:[#allocation2 + $0x708] sm:$0xff] }
 0x5a7   :  { %v875_v38 = vpop.f32.mrf.mxu0 }
 0x5a8   :  { %v876_v40 = vadd.f32 %v1180_v34, %v875_v38  ;;  %v924_v43 = vadd.f32 %v919_v39, %v1404_v48  ;;  %v944_v48 = vld [vmem:[#allocation2 + $0x6c0] sm:$0xff]  ;;  %v1098_v39 = vld [vmem:[#allocation2 + $0x7b8] sm:$0xff] }
 0x5a9   :  { %978 = vmatpush.msrb.mxu0 %v944_v48  ;;  %v1009_v34 = vld [vmem:[#allocation2 + $0x720] sm:$0xff]  ;;  %1116 = vmatpush.msra.mxu3 %v1098_v39 }
 0x5aa   :  { %v899_v45 = vadd.f32 %v898_v41, %v876_v40  ;;  %v926_v0 = vmax.f32 %v924_v43, 0.0  ;;  %1062 = vmatpush.msra.mxu1 %v1009_v34  ;;  %v1097_v40 = vld [vmem:[#allocation2 + $0x7b0] sm:$0xff]  ;;  %v1096_v41 = vld [vmem:[#allocation2 + $0x7a8] sm:$0xff] }
 0x5ab   :  { %979 = vmatpush.msrb.mxu0 %v943_v57  ;;  %1117 = vmatpush.msra.mxu3 %v1097_v40  ;;  %v1023_v43 = vld [vmem:[#allocation2 + $0x790] sm:$0x3] }
 0x5ac   :  { %v945_v50 = vrot.slane %v926_v0, 1  ;;  %1063 = vmatpush.msra.mxu1 %v1008_v37 }
 0x5ad   :  { %v921_v46 = vpop.f32.mrf.mxu3  ;;  %1118 = vmatpush.msra.mxu3 %v1096_v41 }
 0x5ae   :  { %v922_v47 = vadd.f32 %v921_v46, %v899_v45  ;;  %1064 = vmatpush.msra.mxu1 %v1007_v58  ;;  %v1095_v46 = vld [vmem:[#allocation2 + $0x7a0] sm:$0xff] }
 0x5af   :  { %1119 = vmatpush.msra.mxu3 %v1095_v46 }
 0x5b0   :  { %v925_v42 = vadd.f32 %v922_v47, %v1407_v2  ;;  %v942_v2 = vld [vmem:[#allocation2 + $0x6b0] sm:$0xff]  ;;  %v1181_v47 = vld [vmem:[#allocation2 + $0x798] ss:$0 sm:$0xff] }
 0x5b1   :  { %980 = vmatpush.msrb.mxu0 %v942_v2 }
 0x5b2   :  { %v927_v49 = vmax.f32 %v925_v42, 0.0 }
 0x5b3   :  { %981 = vmatpush.msrb.mxu0 %v941_v59 }
 0x5b4   :  { %v946_v51 = vrot.slane %v927_v49, 1 }
 0x5b5   :  { %982 = vmatpush.msrb.mxu0 %v940_v60 }
 0x5b6   :  { %v948_v52 = vsel %vm151_vm1, %v946_v51, %v945_v50  ;;  %v947_v53 = vsel %vm151_vm1, %v945_v50, %v946_v51  ;;  %v1182_v50 = vld [vmem:[#allocation2 + $0x7c0] ss:$0 sm:$0xff] }
 0x5b7   :  { %v950_v54 = vmax.f32 %v927_v49, %v948_v52  ;;  %v949_v55 = vmax.f32 %v926_v0, %v947_v53  ;;  %983 = vmatpush.msrb.mxu0 %v939_v61 }
 0x5b9   :  { %969 = vmatpush.msra.mxu2 %v950_v54  ;;  %984 = vmatpush.msrb.mxu0 %v938_v28 }
 0x5bb   :  { %970 = vmatpush.msra.mxu2 %v949_v55  ;;  %985 = vmatpush.msrb.mxu0 %v937_v62 }
 0x5bc   :  { %1163 = vmatmul.msk.f32.vlgmr.msra.gmra.mxu2 %vm951_vm12, %v928_v56 }
 0x5bd   :  { %986 = vmatpush.msrb.mxu0 %v936_v63  ;;  %1036 = vmatpush.msrb.mxu2 %v1005_v9 }
 0x5bf   :  { %987 = vmatpush.msrb.mxu0 %v935_v1  ;;  %1037 = vmatpush.msrb.mxu2 %v1004_v10 }
 0x5c1   :  { %988 = vmatpush.msrb.mxu0 %v934_v3  ;;  %1038 = vmatpush.msrb.mxu2 %v1003_v11 }
 0x5c3   :  { %989 = vmatpush.msrb.mxu0 %v933_v4  ;;  %1039 = vmatpush.msrb.mxu2 %v1002_v12 }
 0x5c5   :  { %990 = vmatpush.msrb.mxu0 %v932_v5  ;;  %1040 = vmatpush.msrb.mxu2 %v1001_v13 }
 0x5c7   :  { %991 = vmatpush.msrb.mxu0 %v931_v6  ;;  %1041 = vmatpush.msrb.mxu2 %v1000_v14 }
 0x5c9   :  { %992 = vmatpush.msrb.mxu0 %v930_v7  ;;  %1042 = vmatpush.msrb.mxu2 %v999_v15 }
 0x5cb   :  { %993 = vmatpush.msrb.mxu0 %v929_v8  ;;  %1043 = vmatpush.msrb.mxu2 %v998_v18 }
 0x63f   :  { %v972_v44 = vpop.f32.mrf.mxu2 }
 0x640   :  { %975 = vrot.lane.b32.xlu1 %v972_v44, %s1241_s24 }
 0x6b2   :  { %v976_v16 = vpop.permute.xlu1 %975 }
 0x6b3   :  { %v977_v17 = vmax.f32 %v972_v44, %v976_v16 }
 0x6b5   :  { %994 = vmatmul.f32.vlgmr.msrb.gmra.mxu0 %v977_v17 }
 0x732   :  { %v995_v35 = vpop.f32.mrf.mxu0 }
 0x733   :  { %1164 = vmatmul.msk.f32.vlgmr.msrb.gmra.mxu2 %vm200_vm2, %v995_v35 }
 0x7b6   :  { %v1045_v33 = vpop.f32.mrf.mxu2 }
 0x7b7   :  { %v1048_v38 = vmul.f32 %v1045_v33, %v1006_v36 }
 0x7b9   :  { %1065 = vmatmul.f32.vlgmr.msra.gmra.mxu1 %v1048_v38 }
 0x836   :  { %v1066_v45 = vpop.f32.mrf.mxu1 }
 0x837   :  { %1089 = vmatpush.msra.mxu2 %v1066_v45 }
 0x838   :  { %1165 = vmatmul.msk.f32.vlgmr.msra.gmra.mxu2 %vm1070_vm13, %v1023_v43 }
 0x8bb   :  { %v1091_v0 = vpop.f32.mrf.mxu2 }
 0x8bc   :  { %v1092_v42 = vadd.f32 %v1181_v47, %v1091_v0 }
 0x8be   :  { %v1094_v49 = vmax.f32 %v1092_v42, 0.0 }
 0x8c0   :  { %1166 = vmatmul.msk.f32.vlgmr.msra.gmra.mxu3 %vm310_vm7, %v1094_v49 }
 0x943   :  { %v1121_v51 = vpop.f32.mrf.mxu3 }
 0x944   :  { %v1122_v52 = vadd.f32 %v1182_v50, %v1121_v51 }
 0x946   :  { %1125 = vst.msk [vmem:[#allocation5] sm:$0x3] %vm1124_vm14, %v1122_v52 }
 0x947   :  { %1136 = dma.vmem_to_hbm [thread:$0]  %s1132_s26, 32, %s1134_s29, [#allocation4]  }
 0x948   :  { %1233 = dma.done.wait [#allocation4], 32  }
 0x949   :  { %1234 = vsyncadd [#allocation4], 4294967264 }
 0x94a   :  { %1141 = vsyncpa [#allocation3], 1 }
 0x94b   :  { %1142 = vsyncpa [#allocation4], 1 }

</bundles_post_ra>
